<compile_context>
chip_gen: v7x
topology: tpu7x:2x2x1
jax: 0.10.0
libtpu: 0.0.40
codegen_flags: <defaults>
</compile_context>

<pallas_src>
import jax
import jax.numpy as jnp
from jax.experimental import pallas as pl
from jax.experimental.pallas import tpu as pltpu

TB_MAX = 1024     # max batch-tile rows per grid step
TB_MIN = 256      # min tile (keeps batch dim comfortably (8,)-aligned)
W3_PAD = 128      # W3 padded to 128 MXU output lanes; only column 0 is real


def _pick_tile(batch):
    """Pick a batch tile: big enough to amortize grid-step overhead, and
    guaranteeing >= 2 grid steps for large batches (v7x dual-TC sharding)."""
    half = -(-batch // 2)                 # cdiv(batch, 2)
    tb = -(-half // 256) * 256            # round up to a multiple of 256
    return max(TB_MIN, min(TB_MAX, tb))


def mlp_kernel(x_ref, w1_ref, b1_ref, w2_ref, b2_ref, w3_ref, b3_ref, o_ref):
    # x_ref: (TB, 9) bf16; weights bf16; biases f32; all dots accumulate in f32.
    x = x_ref[...]
    h1 = jnp.dot(x, w1_ref[...], preferred_element_type=jnp.float32) + b1_ref[...]
    h1 = jnp.maximum(h1, 0.0).astype(jnp.bfloat16)
    h2 = jnp.dot(h1, w2_ref[...], preferred_element_type=jnp.float32) + b2_ref[...]
    h2 = jnp.maximum(h2, 0.0).astype(jnp.bfloat16)
    # Padded-width MXU pass (N=128 costs the same as N=1); keep only column 0.
    out = jnp.dot(h2, w3_ref[...], preferred_element_type=jnp.float32)   # (TB, 128)
    o_ref[...] = (out[:, :1] + b3_ref[...]).astype(o_ref.dtype)          # (TB, 1)


def neural_network_forward(x, params, *, tb=None):
    w1, b1, w2, b2, w3, b3 = params
    B, D_in = x.shape
    H = w1.shape[1]
    if tb is None:
        tb = _pick_tile(B)

    # bf16 operands for the MXU; biases stay f32 (added to the f32 accumulator).
    xb = x.astype(jnp.bfloat16)
    w1b = w1.astype(jnp.bfloat16)
    w2b = w2.astype(jnp.bfloat16)
    # Pad the (512, 1) head to (512, 128) so the final MXU pass is well-shaped;
    # only column 0 carries real weights.
    w3p = jnp.zeros((H, W3_PAD), jnp.bfloat16).at[:, :1].set(w3.astype(jnp.bfloat16))
    b1f = b1.astype(jnp.float32).reshape(1, H)
    b2f = b2.astype(jnp.float32).reshape(1, H)
    b3f = b3.astype(jnp.float32).reshape(1, 1)

    # Pad the batch up to a multiple of the tile so the grid divides evenly.
    n_tiles = pl.cdiv(B, tb)
    Bp = n_tiles * tb
    if Bp != B:
        xb = jnp.pad(xb, ((0, Bp - B), (0, 0)))

    const = lambda shape: pl.BlockSpec(shape, lambda i: (0, 0))

    flops = int(2 * Bp * (D_in * H + H * H + H * W3_PAD))
    bytes_accessed = int(
        xb.size * 2 + w1b.size * 2 + w2b.size * 2 + w3p.size * 2
        + b1f.size * 4 + b2f.size * 4 + b3f.size * 4 + Bp * 1 * 4
    )

    out = pl.pallas_call(
        mlp_kernel,
        out_shape=jax.ShapeDtypeStruct((Bp, 1), jnp.float32),
        grid_spec=pltpu.PrefetchScalarGridSpec(
            num_scalar_prefetch=0,
            grid=(n_tiles,),
            in_specs=[
                pl.BlockSpec((tb, D_in), lambda i: (i, 0)),   # x tile (streamed)
                const((D_in, H)),                             # W1 (VMEM-resident)
                const((1, H)),                                # b1
                const((H, H)),                                # W2 (VMEM-resident)
                const((1, H)),                                # b2
                const((H, W3_PAD)),                           # W3 (padded, resident)
                const((1, 1)),                                # b3
            ],
            out_specs=pl.BlockSpec((tb, 1), lambda i: (i, 0)),
        ),
        compiler_params=pltpu.CompilerParams(
            dimension_semantics=("parallel",),                # shard batch across TCs on v7x
            vmem_limit_bytes=32 * 1024 * 1024,
        ),
        cost_estimate=pl.CostEstimate(
            flops=flops, transcendentals=0, bytes_accessed=bytes_accessed),
    )(xb, w1b, b1f, w2b, b2f, w3p, b3f)

    return out[:B]


def init_params(key):
    # Deterministic init mimicking nn.Linear's uniform(-1/sqrt(fan_in), 1/sqrt(fan_in)).
    ks = jax.random.split(key, 6)

    def linear(kw, kb, fan_in, fan_out):
        bound = 1.0 / jnp.sqrt(fan_in)
        # stored as (in, out) so the kernel computes x @ W
        w = jax.random.uniform(kw, (fan_in, fan_out), jnp.float32, -bound, bound)
        b = jax.random.uniform(kb, (1, fan_out), jnp.float32, -bound, bound)
        return w, b

    w1, b1 = linear(ks[0], ks[1], 9, 512)
    w2, b2 = linear(ks[2], ks[3], 512, 512)
    w3, b3 = linear(ks[4], ks[5], 512, 1)
    return (w1, b1, w2, b2, w3, b3)


if __name__ == "__main__":
    key = jax.random.PRNGKey(0)
    k_x, k_p = jax.random.split(key)
    B = 8
    x = jax.random.normal(k_x, (B, 9), jnp.float32)
    params = init_params(k_p)

    out = neural_network_forward(x, params)
    out = jax.block_until_ready(out)

    # Reference in plain JAX with the same bf16-weight / f32-accumulate math.
    w1, b1, w2, b2, w3, b3 = params
    xb = x.astype(jnp.bfloat16)
    h1 = jnp.maximum(
        jnp.dot(xb, w1.astype(jnp.bfloat16), preferred_element_type=jnp.float32) + b1, 0.0
    ).astype(jnp.bfloat16)
    h2 = jnp.maximum(
        jnp.dot(h1, w2.astype(jnp.bfloat16), preferred_element_type=jnp.float32) + b2, 0.0
    ).astype(jnp.bfloat16)
    ref = jnp.dot(h2, w3.astype(jnp.bfloat16), preferred_element_type=jnp.float32) + b3

    assert out.shape == (B, 1)
    assert jnp.allclose(out, ref, atol=1e-2, rtol=1e-2), (
        f"max abs diff {jnp.max(jnp.abs(out - ref))}")

    print("KERNEL_OK")
</pallas_src>

<mosaic_0001>
module attributes {stable_mosaic.version = 11 : i64} {
  func.func @mlp_kernel(%arg0: i32, %arg1: memref<256x9xbf16, #tpu.memory_space<vmem>>, %arg2: memref<9x512xbf16, #tpu.memory_space<vmem>>, %arg3: memref<1x512xf32, #tpu.memory_space<vmem>>, %arg4: memref<512x512xbf16, #tpu.memory_space<vmem>>, %arg5: memref<1x512xf32, #tpu.memory_space<vmem>>, %arg6: memref<512x128xbf16, #tpu.memory_space<vmem>>, %arg7: memref<1x1xf32, #tpu.memory_space<vmem>>, %arg8: memref<256x1xf32, #tpu.memory_space<vmem>>) attributes {dimension_semantics = [#tpu.dimension_semantics<parallel>], iteration_bounds = array<i64: 1>, scalar_prefetch = 0 : i64, scratch_operands = 0 : i64, tpu.core_type = #tpu.core_type<tc>, window_params = [{transform_indices = @transform_0, window_bounds = array<i64: 256, 9>}, {pipeline_mode = #tpu.pipeline_mode<synchronous>, transform_indices = @transform_1, window_bounds = array<i64: 9, 512>}, {pipeline_mode = #tpu.pipeline_mode<synchronous>, transform_indices = @transform_2, window_bounds = array<i64: 1, 512>}, {pipeline_mode = #tpu.pipeline_mode<synchronous>, transform_indices = @transform_3, window_bounds = array<i64: 512, 512>}, {pipeline_mode = #tpu.pipeline_mode<synchronous>, transform_indices = @transform_4, window_bounds = array<i64: 1, 512>}, {pipeline_mode = #tpu.pipeline_mode<synchronous>, transform_indices = @transform_5, window_bounds = array<i64: 512, 128>}, {pipeline_mode = #tpu.pipeline_mode<synchronous>, transform_indices = @transform_6, window_bounds = array<i64: 1, 1>}, {transform_indices = @transform_7, window_bounds = array<i64: 256, 1>}]} {
    %c0 = arith.constant 0 : index
    %c0_0 = arith.constant 0 : index
    %0 = vector.load %arg1[%c0, %c0_0] : memref<256x9xbf16, #tpu.memory_space<vmem>>, vector<256x9xbf16>
    %c0_1 = arith.constant 0 : index
    %c0_2 = arith.constant 0 : index
    %1 = vector.load %arg2[%c0_1, %c0_2] : memref<9x512xbf16, #tpu.memory_space<vmem>>, vector<9x512xbf16>
    %cst = arith.constant dense<0.000000e+00> : vector<256x512xf32>
    %2 = tpu.matmul %0, %1, %cst {dimension_numbers = #tpu.dot_dimension_numbers<[1], [0], [0], [1], [0, 0, 1, 1], [], []>} : vector<256x9xbf16>, vector<9x512xbf16>, vector<256x512xf32> -> vector<256x512xf32>
    %c0_3 = arith.constant 0 : index
    %c0_4 = arith.constant 0 : index
    %3 = vector.load %arg3[%c0_3, %c0_4] : memref<1x512xf32, #tpu.memory_space<vmem>>, vector<1x512xf32>
    %4 = vector.broadcast %3 : vector<1x512xf32> to vector<256x512xf32>
    %5 = arith.addf %2, %4 : vector<256x512xf32>
    %cst_5 = arith.constant 0.000000e+00 : f32
    %6 = vector.broadcast %cst_5 : f32 to vector<256x512xf32>
    %7 = arith.maximumf %5, %6 : vector<256x512xf32>
    %8 = arith.truncf %7 : vector<256x512xf32> to vector<256x512xbf16>
    %c0_6 = arith.constant 0 : index
    %c0_7 = arith.constant 0 : index
    %9 = vector.load %arg4[%c0_6, %c0_7] : memref<512x512xbf16, #tpu.memory_space<vmem>>, vector<512x512xbf16>
    %cst_8 = arith.constant dense<0.000000e+00> : vector<256x512xf32>
    %10 = tpu.matmul %8, %9, %cst_8 {dimension_numbers = #tpu.dot_dimension_numbers<[1], [0], [0], [1], [0, 0, 1, 1], [], []>} : vector<256x512xbf16>, vector<512x512xbf16>, vector<256x512xf32> -> vector<256x512xf32>
    %c0_9 = arith.constant 0 : index
    %c0_10 = arith.constant 0 : index
    %11 = vector.load %arg5[%c0_9, %c0_10] : memref<1x512xf32, #tpu.memory_space<vmem>>, vector<1x512xf32>
    %12 = vector.broadcast %11 : vector<1x512xf32> to vector<256x512xf32>
    %13 = arith.addf %10, %12 : vector<256x512xf32>
    %cst_11 = arith.constant 0.000000e+00 : f32
    %14 = vector.broadcast %cst_11 : f32 to vector<256x512xf32>
    %15 = arith.maximumf %13, %14 : vector<256x512xf32>
    %16 = arith.truncf %15 : vector<256x512xf32> to vector<256x512xbf16>
    %c0_12 = arith.constant 0 : index
    %c0_13 = arith.constant 0 : index
    %17 = vector.load %arg6[%c0_12, %c0_13] : memref<512x128xbf16, #tpu.memory_space<vmem>>, vector<512x128xbf16>
    %cst_14 = arith.constant dense<0.000000e+00> : vector<256x128xf32>
    %18 = tpu.matmul %16, %17, %cst_14 {dimension_numbers = #tpu.dot_dimension_numbers<[1], [0], [0], [1], [0, 0, 1, 1], [], []>} : vector<256x512xbf16>, vector<512x128xbf16>, vector<256x128xf32> -> vector<256x128xf32>
    %19 = vector.extract_strided_slice %18 {offsets = [0, 0], sizes = [256, 1], strides = [1, 1]} : vector<256x128xf32> to vector<256x1xf32>
    %c0_15 = arith.constant 0 : index
    %c0_16 = arith.constant 0 : index
    %20 = vector.load %arg7[%c0_15, %c0_16] : memref<1x1xf32, #tpu.memory_space<vmem>>, vector<1x1xf32>
    %21 = vector.broadcast %20 : vector<1x1xf32> to vector<256x1xf32>
    %22 = arith.addf %19, %21 : vector<256x1xf32>
    %c0_17 = arith.constant 0 : index
    %c0_18 = arith.constant 0 : index
    %23 = vector.load %arg8[%c0_17, %c0_18] : memref<256x1xf32, #tpu.memory_space<vmem>>, vector<256x1xf32>
    tpu.vector_store %arg8[%c0_17, %c0_18], %22 {strides = array<i32>} : memref<256x1xf32, #tpu.memory_space<vmem>>, vector<256x1xf32>,
    return
  }
  func.func @transform_0(%arg0: i32) -> (i32, i32) {
    %c0_i32 = arith.constant 0 : i32
    %c0_i32_0 = arith.constant 0 : i32
    return %arg0, %c0_i32 : i32, i32
  }
  func.func @transform_1(%arg0: i32) -> (i32, i32) {
    %c0_i32 = arith.constant 0 : i32
    %c0_i32_0 = arith.constant 0 : i32
    %c0_i32_1 = arith.constant 0 : i32
    return %c0_i32, %c0_i32_0 : i32, i32
  }
  func.func @transform_2(%arg0: i32) -> (i32, i32) {
    %c0_i32 = arith.constant 0 : i32
    %c0_i32_0 = arith.constant 0 : i32
    %c0_i32_1 = arith.constant 0 : i32
    return %c0_i32, %c0_i32_0 : i32, i32
  }
  func.func @transform_3(%arg0: i32) -> (i32, i32) {
    %c0_i32 = arith.constant 0 : i32
    %c0_i32_0 = arith.constant 0 : i32
    %c0_i32_1 = arith.constant 0 : i32
    return %c0_i32, %c0_i32_0 : i32, i32
  }
  func.func @transform_4(%arg0: i32) -> (i32, i32) {
    %c0_i32 = arith.constant 0 : i32
    %c0_i32_0 = arith.constant 0 : i32
    %c0_i32_1 = arith.constant 0 : i32
    return %c0_i32, %c0_i32_0 : i32, i32
  }
  func.func @transform_5(%arg0: i32) -> (i32, i32) {
    %c0_i32 = arith.constant 0 : i32
    %c0_i32_0 = arith.constant 0 : i32
    %c0_i32_1 = arith.constant 0 : i32
    return %c0_i32, %c0_i32_0 : i32, i32
  }
  func.func @transform_6(%arg0: i32) -> (i32, i32) {
    %c0_i32 = arith.constant 0 : i32
    %c0_i32_0 = arith.constant 0 : i32
    %c0_i32_1 = arith.constant 0 : i32
    return %c0_i32, %c0_i32_0 : i32, i32
  }
  func.func @transform_7(%arg0: i32) -> (i32, i32) {
    %c0_i32 = arith.constant 0 : i32
    %c0_i32_0 = arith.constant 0 : i32
    return %arg0, %c0_i32 : i32, i32
  }
}

</mosaic_0001>

<bundles_post_ra>
// kernel: tpu_custom_call.1
= control target key start
LH: loop header
LB: loop body
LE: loop exit
PB: predicated region body
PF: predicated region fallthrough
CT: control target
= control target key end

     0   :  { %s5048_s0 = inlined_call_operand.vmem [shape: bf16[256,9], index: 0, kind: input, shape index: {}]   ;;  %s5049_s1 = inlined_call_operand.vmem [shape: bf16[9,512], index: 1, kind: input, shape index: {}]   ;;  %s5050_s2 = inlined_call_operand.vmem [shape: f32[1,512], index: 2, kind: input, shape index: {}]   ;;  %s5051_s3 = inlined_call_operand.hbm [shape: bf16[512,512], index: 3, kind: input, shape index: {}]   ;;  %s5052_s4 = inlined_call_operand.vmem [shape: f32[1,512], index: 4, kind: input, shape index: {}]   ;;  %s5053_s5 = inlined_call_operand.hbm [shape: bf16[512,128], index: 5, kind: input, shape index: {}]   ;;  %s5054_s6 = inlined_call_operand.<no memory space> [shape: f32[1,1], index: 6, kind: input, shape index: {}]   ;;  %s5055_s7 = inlined_call_operand.vmem [shape: f32[256,1], index: 7, kind: output, shape index: {}]  }
   0x1   :  { %v12_v0 = vstv %s5054_s6 }
   0x2   :  { %13 = vst [vmem:[#allocation2] sm:$0x1] %v12_v0 }
   0x3   :  { %14 = vsyncpa [#allocation4], 0 }
   0x4   :  { %15 = vsyncpa [#allocation6], 0  ;;  %s4259_s26 = smov [#allocation3]   ;;  %s4211_s30 = scalar_lea.hbm %s5051_s3, 16384 }
   0x5   :  { %s27_s27 = sshll.u32 %s4259_s26, 4  ;;  %p4212_p0 = scmp.ne.s32.totalorder %s5051_s3, %s4211_s30  ;;  %s28_s27 = int_to_ptr.vmem [resolvable:$true] %s27_s27 }
   0x6   :  { %p4215_p1 = scmp.lt.u32.totalorder %s4211_s30, %s5051_s3 }
   0x8   :  { %p4217_p2 = pnand %p4215_p1, %p4212_p0 }
   0xa   :  { %4220 = shalt.err (!%p4217_p2)
}
   0xb   :  { %s4221_s6 = scalar_lea.vmem %s28_s27, 16384  ;;  %p4226_p4 = scmp.lt.s32.totalorder %s28_s27, %s28_s27 }
   0xc   :  { %p4222_p3 = scmp.ne.s32.totalorder %s28_s27, %s4221_s6  ;;  %p4227_p5 = scmp.lt.s32.totalorder %s4221_s6, %s4221_s6 }
   0xe   :  { %p4228_p6 = por %p4227_p5, %p4226_p4 }
  0x10   :  { %p4229_p7 = pnand %p4228_p6, %p4222_p3 }
  0x12   :  { %4232 = shalt.err (!%p4229_p7)
}
  0x13   :  { %s4260_s12 = smov 256   ;;  %s4261_s13 = smov 16  }
  0x14   :  { %33 = dma.hbm_to_vmem [thread:$0]  %s5051_s3, 16384, %s28_s27, [#allocation4], %s4260_s12, %s4260_s12, %s4261_s13  }
  0x15   :  { %s4262_s16 = smov [#allocation5]   ;;  %s4233_s20 = scalar_lea.hbm %s5053_s5, 4096 }
  0x16   :  { %s41_s17 = sshll.u32 %s4262_s16, 4  ;;  %p4234_p8 = scmp.ne.s32.totalorder %s5053_s5, %s4233_s20  ;;  %s42_s17 = int_to_ptr.vmem [resolvable:$true] %s41_s17 }
  0x17   :  { %p4237_p9 = scmp.lt.u32.totalorder %s4233_s20, %s5053_s5 }
  0x19   :  { %p4239_p10 = pnand %p4237_p9, %p4234_p8 }
  0x1b   :  { %4242 = shalt.err (!%p4239_p10)
}
  0x1c   :  { %s4243_s25 = scalar_lea.vmem %s42_s17, 4096  ;;  %p4248_p12 = scmp.lt.s32.totalorder %s42_s17, %s42_s17 }
  0x1d   :  { %p4244_p11 = scmp.ne.s32.totalorder %s42_s17, %s4243_s25  ;;  %p4249_p13 = scmp.lt.s32.totalorder %s4243_s25, %s4243_s25 }
  0x1f   :  { %p4250_p0 = por %p4249_p13, %p4248_p12 }
  0x21   :  { %p4251_p1 = pnand %p4250_p0, %p4244_p11 }
  0x23   :  { %4254 = shalt.err (!%p4251_p1)
}
  0x24   :  { %s4263_s3 = smov 64   ;;  %s4264_s26 = smov 4  }
  0x25   :  { %47 = dma.hbm_to_vmem [thread:$0]  %s5053_s5, 4096, %s42_s17, [#allocation6], %s4263_s3, %s4263_s3, %s4264_s26  }
  0x26   :  { %4255 = dma.done.wait [#allocation4], 16384  }
  0x27   :  { %4256 = vsyncadd [#allocation4], 4294950912 }
  0x28   :  { %4257 = dma.done.wait [#allocation6], 4096  }
  0x29   :  { %4258 = vsyncadd [#allocation6], 4294963200  ;;  %vm260_vm0 = vcmask 1043456   ;;  %v4265_v1 = vmov 0   ;;  %vm261_vm1 = vcmask 1044480   ;;  %v4266_v2 = vmov 65535  }
  0x2a   :  { %308 = vmatprep.mubr.bf16.mxu0 %v4265_v1  ;;  %501 = vmatprep.mubr.bf16.mxu1 %v4265_v1  ;;  %v262_v3 = vsel %vm260_vm0, 4294967295, %v4266_v2  ;;  %v3965_v5 = vld [vmem:[%s5049_s1 + $0x4] ss:$16 sps:$4 sm:$0x1f]   ;;  %vm211_vm2 = vcmask 72704   ;;  %v3969_v10 = vld [vmem:[%s5048_s0 + $0x8] sm:$0xff]  }
  0x2b   :  { %v263_v4 = vsel %vm261_vm1, %v262_v3, 0  ;;  %v3967_v6 = vld [vmem:[%s5049_s1] ss:$16 sps:$4 sm:$0x1f]   ;;  %v3985_v15 = vld [vmem:[#allocation3 + $0x4] ss:$16 sps:$4 sm:$0xff]  }
  0x2c   :  { %v268_v7 = vand.u32 %v3965_v5, %v263_v4  ;;  %v265_v8 = vand.u32 %v3967_v6, %v263_v4  ;;  %v3968_v9 = vld [vmem:[%s5048_s0] sm:$0xff]   ;;  %v3979_v11 = vld [vmem:[%s5049_s1 + $0xc] ss:$16 sps:$4 sm:$0x1f]   ;;  %v3970_v21 = vld [vmem:[%s5048_s0 + $0x10] sm:$0xff]   ;;  %vm3225_vm3 = vcmask 7168  }
  0x2d   :  { %v3982_v12 = vld [vmem:[%s5049_s1 + $0x8] ss:$16 sps:$4 sm:$0x1f]   ;;  %v274_v13 = vand.u32 %v3979_v11, %v263_v4  ;;  %v3983_v14 = vld [vmem:[#allocation3] ss:$16 sps:$4 sm:$0xff]  }
  0x2e   :  { %276 = vmatprep.subr.bf16.mxu0 %v268_v7  ;;  %v271_v16 = vand.u32 %v3982_v12, %v263_v4  ;;  %v3988_v17 = vld [vmem:[#allocation3 + $0xc] ss:$16 sps:$4 sm:$0xff]   ;;  %v3986_v18 = vld [vmem:[#allocation3 + $0x8] ss:$16 sps:$4 sm:$0xff]   ;;  %v3990_v19 = vld [vmem:[#allocation3 + $0x20] ss:$16 sps:$4 sm:$0xff]  }
  0x2f   :  { %277 = vmatpush1.bf16.msra.mxu0 %v265_v8  ;;  %469 = vmatprep.subr.bf16.mxu1 %v274_v13  ;;  %v3992_v20 = vld [vmem:[#allocation3 + $0x24] ss:$16 sps:$4 sm:$0xff]   ;;  %v3995_v22 = vld [vmem:[#allocation3 + $0x2c] ss:$16 sps:$4 sm:$0xff]   ;;  %v3993_v23 = vld [vmem:[#allocation3 + $0x28] ss:$16 sps:$4 sm:$0xff]  }
  0x30   :  { %470 = vmatpush1.bf16.msra.mxu1 %v271_v16  ;;  %1644 = vmatprep.subr.bf16.mxu0 %v3985_v15  ;;  %v3997_v24 = vld [vmem:[#allocation3 + $0x40] ss:$16 sps:$4 sm:$0xff]   ;;  %v3999_v25 = vld [vmem:[#allocation3 + $0x44] ss:$16 sps:$4 sm:$0xff]   ;;  %v4002_v26 = vld [vmem:[#allocation3 + $0x4c] ss:$16 sps:$4 sm:$0xff]  }
  0x31   :  { %2030 = vmatprep.subr.bf16.mxu1 %v3988_v17  ;;  %v3971_v27 = vld [vmem:[%s5048_s0 + $0x18] sm:$0xff]   ;;  %v4004_v30 = vld [vmem:[#allocation3 + $0x60] ss:$16 sps:$4 sm:$0xff]   ;;  %v3973_v46 = vld [vmem:[%s5048_s0 + $0x28] sm:$0xff]  }
  0x32   :  { %3284 = vmatmul.mubr.msk.bf16.vlgmr.msra.gmra.mrb[0].mxu0 %vm211_vm2, %v3968_v9  ;;  %v4000_v28 = vld [vmem:[#allocation3 + $0x48] ss:$16 sps:$4 sm:$0xff]   ;;  %v4006_v29 = vld [vmem:[#allocation3 + $0x64] ss:$16 sps:$4 sm:$0xff]   ;;  %v4009_v31 = vld [vmem:[#allocation3 + $0x6c] ss:$16 sps:$4 sm:$0xff]  }
  0x33   :  { %318 = vmatprep.mubr.bf16.mxu0 %v4265_v1  ;;  %1645 = vmatpush1.bf16.msra.mxu0 %v3983_v14  ;;  %v4007_v32 = vld [vmem:[#allocation3 + $0x68] ss:$16 sps:$4 sm:$0xff]   ;;  %v4013_v33 = vld [vmem:[#allocation3 + $0x84] ss:$16 sps:$4 sm:$0xff]   ;;  %v4011_v34 = vld [vmem:[#allocation3 + $0x80] ss:$16 sps:$4 sm:$0xff]  }
  0x34   :  { %3300 = vmatmul.mubr.msk.bf16.vlgmr.msra.gmra.mrb[0].mxu1 %vm211_vm2, %v3968_v9  ;;  %1646 = vmatprep.subr.bf16.mxu0 %v3992_v20  ;;  %v4016_v35 = vld [vmem:[#allocation3 + $0x8c] ss:$16 sps:$4 sm:$0xff]   ;;  %v4019_v36 = vld [vmem:[#allocation3 + $0xa4] ss:$16 sps:$4 sm:$0xff]   ;;  %v4014_v38 = vld [vmem:[#allocation3 + $0x88] ss:$16 sps:$4 sm:$0xff]  }
  0x35   :  { %2031 = vmatpush1.bf16.msra.mxu1 %v3986_v18  ;;  %511 = vmatprep.mubr.bf16.mxu1 %v4265_v1  ;;  %v3972_v37 = vld [vmem:[%s5048_s0 + $0x20] sm:$0xff]   ;;  %v4020_v42 = vld [vmem:[#allocation3 + $0xa8] ss:$16 sps:$4 sm:$0xff]   ;;  %v3974_v55 = vld [vmem:[%s5048_s0 + $0x30] sm:$0xff]  }
  0x36   :  { %2032 = vmatprep.subr.bf16.mxu1 %v3995_v22  ;;  %v4017_v39 = vld [vmem:[#allocation3 + $0xa0] ss:$16 sps:$4 sm:$0xff]   ;;  %v4022_v40 = vld [vmem:[#allocation3 + $0xac] ss:$16 sps:$4 sm:$0xff]   ;;  %v4025_v41 = vld [vmem:[#allocation3 + $0xc4] ss:$16 sps:$4 sm:$0xff]  }
  0x37   :  { %1647 = vmatpush1.bf16.msra.mxu0 %v3990_v19  ;;  %v4023_v43 = vld [vmem:[#allocation3 + $0xc0] ss:$16 sps:$4 sm:$0xff]   ;;  %v4028_v44 = vld [vmem:[#allocation3 + $0xcc] ss:$16 sps:$4 sm:$0xff]   ;;  %v4031_v45 = vld [vmem:[#allocation3 + $0xe4] ss:$16 sps:$4 sm:$0xff]  }
  0x38   :  { %1648 = vmatprep.subr.bf16.mxu0 %v3999_v25  ;;  %v4026_v47 = vld [vmem:[#allocation3 + $0xc8] ss:$16 sps:$4 sm:$0xff]   ;;  %v4029_v48 = vld [vmem:[#allocation3 + $0xe0] ss:$16 sps:$4 sm:$0xff]   ;;  %v4034_v49 = vld [vmem:[#allocation3 + $0xec] ss:$16 sps:$4 sm:$0xff]  }
  0x39   :  { %2033 = vmatpush1.bf16.msra.mxu1 %v3993_v23  ;;  %v4037_v50 = vld [vmem:[#allocation3 + $0x104] ss:$16 sps:$4 sm:$0xff]   ;;  %v4032_v51 = vld [vmem:[#allocation3 + $0xe8] ss:$16 sps:$4 sm:$0xff]   ;;  %v4035_v52 = vld [vmem:[#allocation3 + $0x100] ss:$16 sps:$4 sm:$0xff]  }
  0x3a   :  { %3285 = vmatmul.mubr.msk.bf16.gmra.mrb[4].mxu0 %vm211_vm2, %v3969_v10  ;;  %2034 = vmatprep.subr.bf16.mxu1 %v4002_v26  ;;  %v4040_v53 = vld [vmem:[#allocation3 + $0x10c] ss:$16 sps:$4 sm:$0xff]   ;;  %v4043_v54 = vld [vmem:[#allocation3 + $0x124] ss:$16 sps:$4 sm:$0xff]   ;;  %v4038_v56 = vld [vmem:[#allocation3 + $0x108] ss:$16 sps:$4 sm:$0xff]  }
  0x3b   :  { %328 = vmatprep.mubr.bf16.mxu0 %v4265_v1  ;;  %1649 = vmatpush1.bf16.msra.mxu0 %v3997_v24  ;;  %v4041_v57 = vld [vmem:[#allocation3 + $0x120] ss:$16 sps:$4 sm:$0xff]   ;;  %v4046_v58 = vld [vmem:[#allocation3 + $0x12c] ss:$16 sps:$4 sm:$0xff]   ;;  %v4049_v59 = vld [vmem:[#allocation3 + $0x144] ss:$16 sps:$4 sm:$0xff]  }
  0x3c   :  { %1650 = vmatprep.subr.bf16.mxu0 %v4006_v29  ;;  %3301 = vmatmul.mubr.msk.bf16.gmra.mrb[4].mxu1 %vm211_vm2, %v3969_v10  ;;  %v4044_v60 = vld [vmem:[#allocation3 + $0x128] ss:$16 sps:$4 sm:$0xff]   ;;  %v4047_v61 = vld [vmem:[#allocation3 + $0x140] ss:$16 sps:$4 sm:$0xff]   ;;  %v4052_v62 = vld [vmem:[#allocation3 + $0x14c] ss:$16 sps:$4 sm:$0xff]  }
  0x3d   :  { %521 = vmatprep.mubr.bf16.mxu1 %v4265_v1  ;;  %2035 = vmatpush1.bf16.msra.mxu1 %v4000_v28  ;;  %v4055_v63 = vld [vmem:[#allocation3 + $0x164] ss:$16 sps:$4 sm:$0xff]   ;;  %v4050_v0 = vld [vmem:[#allocation3 + $0x148] ss:$16 sps:$4 sm:$0xff]   ;;  %v4053_v3 = vld [vmem:[#allocation3 + $0x160] ss:$16 sps:$4 sm:$0xff]  }
  0x3e   :  { %2036 = vmatprep.subr.bf16.mxu1 %v4009_v31  ;;  %v3975_v2 = vld [vmem:[%s5048_s0 + $0x38] sm:$0xff]   ;;  %v4059_v7 = vld [vmem:[#allocation3 + $0x180] ss:$16 sps:$4 sm:$0xff]   ;;  %v3977_v19 = vld [vmem:[%s5048_s0 + $0x48] sm:$0xff]  }
  0x3f   :  { %1651 = vmatpush1.bf16.msra.mxu0 %v4004_v30  ;;  %v4058_v4 = vld [vmem:[#allocation3 + $0x16c] ss:$16 sps:$4 sm:$0xff]   ;;  %v4061_v5 = vld [vmem:[#allocation3 + $0x184] ss:$16 sps:$4 sm:$0xff]   ;;  %v4056_v6 = vld [vmem:[#allocation3 + $0x168] ss:$16 sps:$4 sm:$0xff]  }
  0x40   :  { %1652 = vmatprep.subr.bf16.mxu0 %v4013_v33  ;;  %v4064_v8 = vld [vmem:[#allocation3 + $0x18c] ss:$16 sps:$4 sm:$0xff]   ;;  %v4067_v9 = vld [vmem:[#allocation3 + $0x1a4] ss:$16 sps:$4 sm:$0xff]   ;;  %v4062_v10 = vld [vmem:[#allocation3 + $0x188] ss:$16 sps:$4 sm:$0xff]  }
  0x41   :  { %2037 = vmatpush1.bf16.msra.mxu1 %v4007_v32  ;;  %v4065_v11 = vld [vmem:[#allocation3 + $0x1a0] ss:$16 sps:$4 sm:$0xff]   ;;  %v4070_v12 = vld [vmem:[#allocation3 + $0x1ac] ss:$16 sps:$4 sm:$0xff]   ;;  %v4073_v14 = vld [vmem:[#allocation3 + $0x1c4] ss:$16 sps:$4 sm:$0xff]   ;;  %v95_v32 = vlaneseq }
  0x42   :  { %3286 = vmatmul.mubr.msk.bf16.gmra.mrb[8].mxu0 %vm211_vm2, %v3970_v21  ;;  %2038 = vmatprep.subr.bf16.mxu1 %v4016_v35  ;;  %v3976_v13 = vld [vmem:[%s5048_s0 + $0x40] sm:$0xff]   ;;  %v4068_v15 = vld [vmem:[#allocation3 + $0x1a8] ss:$16 sps:$4 sm:$0xff]   ;;  %v3978_v20 = vld [vmem:[%s5048_s0 + $0x50] sm:$0xff]  }
  0x43   :  { %338 = vmatprep.mubr.bf16.mxu0 %v4265_v1  ;;  %1653 = vmatpush1.bf16.msra.mxu0 %v4011_v34  ;;  %v4071_v16 = vld [vmem:[#allocation3 + $0x1c0] ss:$16 sps:$4 sm:$0xff]   ;;  %v4076_v17 = vld [vmem:[#allocation3 + $0x1cc] ss:$16 sps:$4 sm:$0xff]   ;;  %v4074_v18 = vld [vmem:[#allocation3 + $0x1c8] ss:$16 sps:$4 sm:$0xff]  }
  0x44   :  { %1654 = vmatprep.subr.bf16.mxu0 %v4019_v36  ;;  %3302 = vmatmul.mubr.msk.bf16.gmra.mrb[8].mxu1 %vm211_vm2, %v3970_v21  ;;  %v3981_v21 = vld [vmem:[%s5048_s0 + $0x58] sm:$0xff]   ;;  %v4077_v24 = vld [vmem:[#allocation3 + $0x1e0] ss:$16 sps:$4 sm:$0xff]   ;;  %v3996_v29 = vld [vmem:[%s5048_s0 + $0x68] sm:$0xff]   ;;  %v4458_v33 = vshrl.u32 %v95_v32, 7 }
  0x45   :  { %531 = vmatprep.mubr.bf16.mxu1 %v4265_v1  ;;  %2039 = vmatpush1.bf16.msra.mxu1 %v4014_v38  ;;  %v4079_v22 = vld [vmem:[#allocation3 + $0x1e4] ss:$16 sps:$4 sm:$0xff]   ;;  %v4082_v23 = vld [vmem:[#allocation3 + $0x1ec] ss:$16 sps:$4 sm:$0xff]   ;;  %v4080_v25 = vld [vmem:[#allocation3 + $0x1e8] ss:$16 sps:$4 sm:$0xff]  }
  0x46   :  { %2040 = vmatprep.subr.bf16.mxu1 %v4022_v40  ;;  %v3989_v26 = vld [vmem:[%s5048_s0 + $0x60] sm:$0xff]   ;;  %v4003_v30 = vld [vmem:[%s5048_s0 + $0x70] sm:$0xff]   ;;  %v4010_v31 = vld [vmem:[%s5048_s0 + $0x78] sm:$0xff]   ;;  %v97_v34 = vsub.s32 0, %v4458_v33  ;;  %v101_v36 = vsub.s32 1, %v4458_v33 }
  0x47   :  { %1655 = vmatpush1.bf16.msra.mxu0 %v4017_v39  ;;  %v4088_v28 = vld [vmem:[#allocation3 + $0x20c] ss:$16 sps:$4 sm:$0xff]  }
  0x48   :  { %1656 = vmatprep.subr.bf16.mxu0 %v4025_v41  ;;  %v93_v35 = vld [vmem:[%s5050_s2] sm:$0xf] }
  0x49   :  { %2041 = vmatpush1.bf16.msra.mxu1 %v4020_v42 }
  0x4a   :  { %3287 = vmatmul.mubr.msk.bf16.gmra.mrb[12].mxu0 %vm211_vm2, %v3971_v27  ;;  %2042 = vmatprep.subr.bf16.mxu1 %v4028_v44 }
  0x4b   :  { %348 = vmatprep.mubr.bf16.mxu0 %v4265_v1  ;;  %1657 = vmatpush1.bf16.msra.mxu0 %v4023_v43 }
  0x4c   :  { %1658 = vmatprep.subr.bf16.mxu0 %v4031_v45  ;;  %3303 = vmatmul.mubr.msk.bf16.gmra.mrb[12].mxu1 %vm211_vm2, %v3971_v27  ;;  %v4085_v27 = vld [vmem:[#allocation3 + $0x204] ss:$16 sps:$4 sm:$0xff]  }
  0x4d   :  { %541 = vmatprep.mubr.bf16.mxu1 %v4265_v1  ;;  %2043 = vmatpush1.bf16.msra.mxu1 %v4026_v47 }
  0x4e   :  { %2044 = vmatprep.subr.bf16.mxu1 %v4034_v49 }
  0x4f   :  { %1659 = vmatpush1.bf16.msra.mxu0 %v4029_v48 }
  0x50   :  { %1660 = vmatprep.subr.bf16.mxu0 %v4037_v50  ;;  %v105_v50 = vsub.s32 2, %v4458_v33 }
  0x51   :  { %2045 = vmatpush1.bf16.msra.mxu1 %v4032_v51 }
  0x52   :  { %3288 = vmatmul.mubr.msk.bf16.gmra.mrb[16].mxu0 %vm211_vm2, %v3972_v37  ;;  %2046 = vmatprep.subr.bf16.mxu1 %v4040_v53 }
  0x53   :  { %358 = vmatprep.mubr.bf16.mxu0 %v4265_v1  ;;  %1661 = vmatpush1.bf16.msra.mxu0 %v4035_v52  ;;  %v109_v52 = vsub.s32 3, %v4458_v33 }
  0x54   :  { %1662 = vmatprep.subr.bf16.mxu0 %v4043_v54  ;;  %3304 = vmatmul.mubr.msk.bf16.gmra.mrb[16].mxu1 %vm211_vm2, %v3972_v37  ;;  %v4467_v37 = vrot.slane %v93_v35, %v97_v34 }
  0x55   :  { %551 = vmatprep.mubr.bf16.mxu1 %v4265_v1  ;;  %2047 = vmatpush1.bf16.msra.mxu1 %v4038_v56  ;;  %v4086_v56 = vld [vmem:[#allocation3 + $0x208] ss:$16 sps:$4 sm:$0xff]  }
  0x56   :  { %2048 = vmatprep.subr.bf16.mxu1 %v4046_v58 }
  0x57   :  { %1663 = vmatpush1.bf16.msra.mxu0 %v4041_v57 }
  0x58   :  { %1664 = vmatprep.subr.bf16.mxu0 %v4049_v59  ;;  %v4091_v59 = vld [vmem:[#allocation3 + $0x224] ss:$16 sps:$4 sm:$0xff]  }
  0x59   :  { %2049 = vmatpush1.bf16.msra.mxu1 %v4044_v60  ;;  %v4094_v60 = vld [vmem:[#allocation3 + $0x22c] ss:$16 sps:$4 sm:$0xff]  }
  0x5a   :  { %3289 = vmatmul.mubr.msk.bf16.gmra.mrb[20].mxu0 %vm211_vm2, %v3973_v46  ;;  %2050 = vmatprep.subr.bf16.mxu1 %v4052_v62 }
  0x5b   :  { %368 = vmatprep.mubr.bf16.mxu0 %v4265_v1  ;;  %1665 = vmatpush1.bf16.msra.mxu0 %v4047_v61 }
  0x5c   :  { %1666 = vmatprep.subr.bf16.mxu0 %v4055_v63  ;;  %3305 = vmatmul.mubr.msk.bf16.gmra.mrb[20].mxu1 %vm211_vm2, %v3973_v46  ;;  %v4483_v63 = vrot.slane %v93_v35, %v105_v50 }
  0x5d   :  { %561 = vmatprep.mubr.bf16.mxu1 %v4265_v1  ;;  %2051 = vmatpush1.bf16.msra.mxu1 %v4050_v0 }
  0x5e   :  { %2052 = vmatprep.subr.bf16.mxu1 %v4058_v4 }
  0x5f   :  { %1667 = vmatpush1.bf16.msra.mxu0 %v4053_v3  ;;  %v4488_v3 = vrot.slane %v93_v35, %v109_v52 }
  0x60   :  { %1668 = vmatprep.subr.bf16.mxu0 %v4061_v5  ;;  %v4089_v5 = vld [vmem:[#allocation3 + $0x220] ss:$16 sps:$4 sm:$0xff]  }
  0x61   :  { %2053 = vmatpush1.bf16.msra.mxu1 %v4056_v6  ;;  %v4092_v6 = vld [vmem:[#allocation3 + $0x228] ss:$16 sps:$4 sm:$0xff]  }
  0x62   :  { %3290 = vmatmul.mubr.msk.bf16.gmra.mrb[24].mxu0 %vm211_vm2, %v3974_v55  ;;  %2054 = vmatprep.subr.bf16.mxu1 %v4064_v8 }
  0x63   :  { %378 = vmatprep.mubr.bf16.mxu0 %v4265_v1  ;;  %1669 = vmatpush1.bf16.msra.mxu0 %v4059_v7  ;;  %v4097_v7 = vld [vmem:[#allocation3 + $0x244] ss:$16 sps:$4 sm:$0xff]  }
  0x64   :  { %1670 = vmatprep.subr.bf16.mxu0 %v4067_v9  ;;  %3306 = vmatmul.mubr.msk.bf16.gmra.mrb[24].mxu1 %vm211_vm2, %v3974_v55  ;;  %v4083_v55 = vld [vmem:[#allocation3 + $0x200] ss:$16 sps:$4 sm:$0xff]  }
  0x65   :  { %571 = vmatprep.mubr.bf16.mxu1 %v4265_v1  ;;  %2055 = vmatpush1.bf16.msra.mxu1 %v4062_v10  ;;  %v4100_v10 = vld [vmem:[#allocation3 + $0x24c] ss:$16 sps:$4 sm:$0xff]  }
  0x66   :  { %2056 = vmatprep.subr.bf16.mxu1 %v4070_v12 }
  0x67   :  { %1671 = vmatpush1.bf16.msra.mxu0 %v4065_v11 }
  0x68   :  { %1672 = vmatprep.subr.bf16.mxu0 %v4073_v14 }
  0x69   :  { %2057 = vmatpush1.bf16.msra.mxu1 %v4068_v15 }
  0x6a   :  { %3291 = vmatmul.mubr.msk.bf16.gmra.mrb[28].mxu0 %vm211_vm2, %v3975_v2  ;;  %2058 = vmatprep.subr.bf16.mxu1 %v4076_v17  ;;  %v4095_v17 = vld [vmem:[#allocation3 + $0x240] ss:$16 sps:$4 sm:$0xff]  }
  0x6b   :  { %388 = vmatprep.mubr.bf16.mxu0 %v4265_v1  ;;  %1673 = vmatpush1.bf16.msra.mxu0 %v4071_v16 }
  0x6c   :  { %3307 = vmatmul.mubr.msk.bf16.gmra.mrb[28].mxu1 %vm211_vm2, %v3975_v2  ;;  %1674 = vmatprep.subr.bf16.mxu0 %v4079_v22  ;;  %v4098_v22 = vld [vmem:[#allocation3 + $0x248] ss:$16 sps:$4 sm:$0xff]  }
  0x6d   :  { %581 = vmatprep.mubr.bf16.mxu1 %v4265_v1  ;;  %2059 = vmatpush1.bf16.msra.mxu1 %v4074_v18 }
  0x6e   :  { %2060 = vmatprep.subr.bf16.mxu1 %v4082_v23 }
  0x6f   :  { %1675 = vmatpush1.bf16.msra.mxu0 %v4077_v24 }
  0x70   :  { %1837 = vmatprep.subr.bf16.mxu0 %v4085_v27 }
  0x71   :  { %2061 = vmatpush1.bf16.msra.mxu1 %v4080_v25 }
  0x72   :  { %3292 = vmatmul.mubr.msk.bf16.gmra.mrb[32].mxu0 %vm211_vm2, %v3976_v13  ;;  %2223 = vmatprep.subr.bf16.mxu1 %v4088_v28  ;;  %v4103_v28 = vld [vmem:[#allocation3 + $0x264] ss:$16 sps:$4 sm:$0xff]  }
  0x73   :  { %398 = vmatprep.mubr.bf16.mxu0 %v4265_v1 }
  0x74   :  { %3308 = vmatmul.mubr.msk.bf16.gmra.mrb[32].mxu1 %vm211_vm2, %v3976_v13 }
  0x75   :  { %591 = vmatprep.mubr.bf16.mxu1 %v4265_v1 }
  0x7a   :  { %3293 = vmatmul.mubr.msk.bf16.gmra.mrb[36].mxu0 %vm211_vm2, %v3977_v19 }
  0x7b   :  { %408 = vmatprep.mubr.bf16.mxu0 %v4265_v1 }
  0x7c   :  { %3309 = vmatmul.mubr.msk.bf16.gmra.mrb[36].mxu1 %vm211_vm2, %v3977_v19 }
  0x7d   :  { %601 = vmatprep.mubr.bf16.mxu1 %v4265_v1 }
  0x82   :  { %3294 = vmatmul.mubr.msk.bf16.gmra.mrb[40].mxu0 %vm211_vm2, %v3978_v20 }
  0x83   :  { %418 = vmatprep.mubr.bf16.mxu0 %v4265_v1 }
  0x84   :  { %3310 = vmatmul.mubr.msk.bf16.gmra.mrb[40].mxu1 %vm211_vm2, %v3978_v20 }
  0x85   :  { %611 = vmatprep.mubr.bf16.mxu1 %v4265_v1 }
  0x8a   :  { %3295 = vmatmul.mubr.msk.bf16.gmra.mrb[44].mxu0 %vm211_vm2, %v3981_v21 }
  0x8b   :  { %428 = vmatprep.mubr.bf16.mxu0 %v4265_v1 }
  0x8c   :  { %3311 = vmatmul.mubr.msk.bf16.gmra.mrb[44].mxu1 %vm211_vm2, %v3981_v21 }
  0x8d   :  { %621 = vmatprep.mubr.bf16.mxu1 %v4265_v1 }
  0x92   :  { %3296 = vmatmul.mubr.msk.bf16.gmra.mrb[48].mxu0 %vm211_vm2, %v3989_v26 }
  0x93   :  { %438 = vmatprep.mubr.bf16.mxu0 %v4265_v1 }
  0x94   :  { %3312 = vmatmul.mubr.msk.bf16.gmra.mrb[48].mxu1 %vm211_vm2, %v3989_v26 }
  0x95   :  { %631 = vmatprep.mubr.bf16.mxu1 %v4265_v1 }
  0x9a   :  { %3297 = vmatmul.mubr.msk.bf16.gmra.mrb[52].mxu0 %vm211_vm2, %v3996_v29 }
  0x9b   :  { %448 = vmatprep.mubr.bf16.mxu0 %v4265_v1 }
  0x9c   :  { %3313 = vmatmul.mubr.msk.bf16.gmra.mrb[52].mxu1 %vm211_vm2, %v3996_v29  ;;  %v4106_v29 = vld [vmem:[#allocation3 + $0x26c] ss:$16 sps:$4 sm:$0xff]  }
  0x9d   :  { %641 = vmatprep.mubr.bf16.mxu1 %v4265_v1 }
  0xa2   :  { %3298 = vmatmul.mubr.msk.bf16.gmra.mrb[56].mxu0 %vm211_vm2, %v4003_v30 }
  0xa3   :  { %458 = vmatprep.mubr.bf16.mxu0 %v4265_v1 }
  0xa4   :  { %3314 = vmatmul.mubr.msk.bf16.gmra.mrb[56].mxu1 %vm211_vm2, %v4003_v30 }
  0xa5   :  { %651 = vmatprep.mubr.bf16.mxu1 %v4265_v1  ;;  %v4471_v1 = vrot.slane %v93_v35, %v101_v36 }
  0xaa   :  { %3299 = vmatmul.mubr.msk.bf16.gmra.mrb[60].mxu0 %vm211_vm2, %v4010_v31 }
  0xac   :  { %3315 = vmatmul.mubr.msk.bf16.gmra.mrb[60].mxu1 %vm211_vm2, %v4010_v31 }
 0x105   :  { %v310_v38 = vpop.f32.mrb[0].mxu0 }
 0x106   :  { %v311_v39 = vadd.f32 %v310_v38, %v4467_v37  ;;  %v312_v40 = vpop.f32.mrb[1].mxu0 }
 0x107   :  { %v313_v41 = vadd.f32 %v312_v40, %v4471_v1  ;;  %v314_v42 = vpop.f32.mrb[2].mxu0  ;;  %v503_v11 = vpop.f32.mrb[0].mxu1 }
 0x108   :  { %v315_v43 = vadd.f32 %v314_v42, %v4467_v37  ;;  %v316_v44 = vpop.f32.mrb[3].mxu0  ;;  %v662_v46 = vmax.f32 %v311_v39, 0.0  ;;  %v504_v14 = vadd.f32 %v503_v11, %v4483_v63  ;;  %v505_v15 = vpop.f32.mrb[1].mxu1 }
 0x109   :  { %v317_v45 = vadd.f32 %v316_v44, %v4471_v1  ;;  %v663_v48 = vmax.f32 %v313_v41, 0.0  ;;  %v506_v18 = vadd.f32 %v505_v15, %v4488_v3  ;;  %v507_v19 = vpop.f32.mrb[2].mxu1  ;;  %v4104_v44 = vld [vmem:[#allocation3 + $0x268] ss:$16 sps:$4 sm:$0xff]  }
 0x10a   :  { %v666_v47 = vmax.f32 %v315_v43, 0.0  ;;  %v664_v23 = vmax.f32 %v504_v14, 0.0  ;;  %v508_v24 = vadd.f32 %v507_v19, %v4483_v63  ;;  %v509_v25 = vpop.f32.mrb[3].mxu1  ;;  %v4101_v43 = vld [vmem:[#allocation3 + $0x260] ss:$16 sps:$4 sm:$0xff]  }
 0x10b   :  { %v667_v49 = vmax.f32 %v317_v45, 0.0  ;;  %v665_v30 = vmax.f32 %v506_v18, 0.0  ;;  %v510_v31 = vadd.f32 %v509_v25, %v4488_v3  ;;  %v4109_v45 = vld [vmem:[#allocation3 + $0x284] ss:$16 sps:$4 sm:$0xff]  }
 0x10c   :  { %v790_v51 = vpack.c.bf16 %v666_v47, %v662_v46  ;;  %v668_v38 = vmax.f32 %v508_v24, 0.0 }
 0x10d   :  { %v791_v53 = vpack.c.bf16 %v667_v49, %v663_v48  ;;  %v320_v54 = vpop.f32.mrb[4].mxu0  ;;  %v669_v41 = vmax.f32 %v510_v31, 0.0  ;;  %v4112_v49 = vld [vmem:[#allocation3 + $0x28c] ss:$16 sps:$4 sm:$0xff]  }
 0x10e   :  { %v321_v57 = vadd.f32 %v320_v54, %v4467_v37  ;;  %v322_v58 = vpop.f32.mrb[5].mxu0  ;;  %v4499_v46 = vpack.c.bf16 %v668_v38, %v664_v23  ;;  %v4119_v38 = vld [vmem:[#allocation3 + $0x2c0] ss:$16 sps:$4 sm:$0xff]  }
 0x10f   :  { %v323_v61 = vadd.f32 %v322_v58, %v4471_v1  ;;  %v324_v62 = vpop.f32.mrb[6].mxu0  ;;  %1676 = vmatprep.mubr.bf16.mxu0 %v791_v53  ;;  %2062 = vmatprep.mubr.bf16.mxu1 %v791_v53  ;;  %v513_v53 = vpop.f32.mrb[4].mxu1 }
 0x110   :  { %v325_v0 = vadd.f32 %v324_v62, %v4467_v37  ;;  %v326_v2 = vpop.f32.mrb[7].mxu0  ;;  %1677 = vmatmul.mubr.bf16.vlgmr.msra.gmra.mrb[64].mxu0 %v790_v51  ;;  %2063 = vmatmul.mubr.bf16.vlgmr.msra.gmra.mrb[64].mxu1 %v790_v51  ;;  %v670_v8 = vmax.f32 %v321_v57, 0.0  ;;  %v4501_v51 = vpack.c.bf16 %v669_v41, %v665_v30  ;;  %v515_v57 = vpop.f32.mrb[5].mxu1 }
 0x111   :  { %v327_v4 = vadd.f32 %v326_v2, %v4471_v1  ;;  %1838 = vmatpush1.bf16.msra.mxu0 %v4083_v55  ;;  %2224 = vmatpush1.bf16.msra.mxu1 %v4086_v56  ;;  %v671_v12 = vmax.f32 %v323_v61, 0.0  ;;  %v514_v56 = vadd.f32 %v513_v53, %v4483_v63  ;;  %v517_v61 = vpop.f32.mrb[6].mxu1  ;;  %v4110_v2 = vld [vmem:[#allocation3 + $0x288] ss:$16 sps:$4 sm:$0xff]   ;;  %v4127_v53 = vld [vmem:[#allocation3 + $0x2e4] ss:$16 sps:$4 sm:$0xff]  }
 0x112   :  { %v674_v9 = vmax.f32 %v325_v0, 0.0  ;;  %1839 = vmatprep.subr.bf16.mxu0 %v4091_v59  ;;  %2225 = vmatprep.subr.bf16.mxu1 %v4094_v60  ;;  %v4107_v59 = vld [vmem:[#allocation3 + $0x280] ss:$16 sps:$4 sm:$0xff]   ;;  %v516_v60 = vadd.f32 %v515_v57, %v4488_v3 }
 0x113   :  { %v675_v13 = vmax.f32 %v327_v4, 0.0  ;;  %v672_v4 = vmax.f32 %v514_v56, 0.0 }
 0x114   :  { %v794_v16 = vpack.c.bf16 %v674_v9, %v670_v8  ;;  %v4115_v9 = vld [vmem:[#allocation3 + $0x2a4] ss:$16 sps:$4 sm:$0xff]   ;;  %v673_v11 = vmax.f32 %v516_v60, 0.0 }
 0x115   :  { %v795_v20 = vpack.c.bf16 %v675_v13, %v671_v12  ;;  %v330_v21 = vpop.f32.mrb[8].mxu0  ;;  %1840 = vmatpush1.bf16.msra.mxu0 %v4089_v5  ;;  %2226 = vmatpush1.bf16.msra.mxu1 %v4092_v6  ;;  %v518_v5 = vadd.f32 %v517_v61, %v4483_v63  ;;  %v519_v6 = vpop.f32.mrb[7].mxu1 }
 0x116   :  { %v331_v26 = vadd.f32 %v330_v21, %v4467_v37  ;;  %v332_v27 = vpop.f32.mrb[9].mxu0  ;;  %1841 = vmatprep.subr.bf16.mxu0 %v4097_v7  ;;  %2227 = vmatprep.subr.bf16.mxu1 %v4100_v10  ;;  %v4118_v10 = vld [vmem:[#allocation3 + $0x2ac] ss:$16 sps:$4 sm:$0xff]   ;;  %v520_v12 = vadd.f32 %v519_v6, %v4488_v3  ;;  %v4116_v21 = vld [vmem:[#allocation3 + $0x2a8] ss:$16 sps:$4 sm:$0xff]  }
 0x117   :  { %v333_v32 = vadd.f32 %v332_v27, %v4471_v1  ;;  %v334_v35 = vpop.f32.mrb[10].mxu0  ;;  %1686 = vmatprep.mubr.bf16.mxu0 %v795_v20  ;;  %2072 = vmatprep.mubr.bf16.mxu1 %v795_v20  ;;  %v676_v15 = vmax.f32 %v518_v5, 0.0  ;;  %v4113_v20 = vld [vmem:[#allocation3 + $0x2a0] ss:$16 sps:$4 sm:$0xff]   ;;  %v4133_v5 = vld [vmem:[#allocation3 + $0x304] ss:$16 sps:$4 sm:$0xff]  }
 0x118   :  { %v335_v39 = vadd.f32 %v334_v35, %v4467_v37  ;;  %v336_v40 = vpop.f32.mrb[11].mxu0  ;;  %1687 = vmatmul.mubr.bf16.gmra.mrb[68].mxu0 %v794_v16  ;;  %2073 = vmatmul.mubr.bf16.gmra.mrb[68].mxu1 %v794_v16  ;;  %v678_v47 = vmax.f32 %v331_v26, 0.0  ;;  %v677_v18 = vmax.f32 %v520_v12, 0.0  ;;  %v4124_v26 = vld [vmem:[#allocation3 + $0x2cc] ss:$16 sps:$4 sm:$0xff]  }
 0x119   :  { %v337_v42 = vadd.f32 %v336_v40, %v4471_v1  ;;  %1842 = vmatpush1.bf16.msra.mxu0 %v4095_v17  ;;  %2228 = vmatpush1.bf16.msra.mxu1 %v4098_v22  ;;  %v679_v54 = vmax.f32 %v333_v32, 0.0  ;;  %v4121_v22 = vld [vmem:[#allocation3 + $0x2c4] ss:$16 sps:$4 sm:$0xff]   ;;  %v4511_v23 = vpack.c.bf16 %v676_v15, %v672_v4  ;;  %v4128_v4 = vld [vmem:[#allocation3 + $0x2e8] ss:$16 sps:$4 sm:$0xff]  }
 0x11a   :  { %v682_v48 = vmax.f32 %v335_v39, 0.0  ;;  %1843 = vmatprep.subr.bf16.mxu0 %v4103_v28  ;;  %2229 = vmatprep.subr.bf16.mxu1 %v4106_v29  ;;  %v4513_v27 = vpack.c.bf16 %v677_v18, %v673_v11  ;;  %v523_v28 = vpop.f32.mrb[8].mxu1 }
 0x11b   :  { %v683_v55 = vmax.f32 %v337_v42, 0.0  ;;  %v524_v31 = vadd.f32 %v523_v28, %v4483_v63  ;;  %v525_v32 = vpop.f32.mrb[9].mxu1 }
 0x11c   :  { %v798_v58 = vpack.c.bf16 %v682_v48, %v678_v47  ;;  %v526_v39 = vadd.f32 %v525_v32, %v4488_v3  ;;  %v527_v40 = vpop.f32.mrb[10].mxu1 }
 0x11d   :  { %v799_v62 = vpack.c.bf16 %v683_v55, %v679_v54  ;;  %v340_v0 = vpop.f32.mrb[12].mxu0  ;;  %1844 = vmatpush1.bf16.msra.mxu0 %v4101_v43  ;;  %2230 = vmatpush1.bf16.msra.mxu1 %v4104_v44  ;;  %v4122_v43 = vld [vmem:[#allocation3 + $0x2c8] ss:$16 sps:$4 sm:$0xff]   ;;  %v680_v44 = vmax.f32 %v524_v31, 0.0  ;;  %v529_v47 = vpop.f32.mrb[11].mxu1 }
 0x11e   :  { %v341_v7 = vadd.f32 %v340_v0, %v4467_v37  ;;  %v342_v8 = vpop.f32.mrb[13].mxu0  ;;  %1845 = vmatprep.subr.bf16.mxu0 %v4109_v45  ;;  %2231 = vmatprep.subr.bf16.mxu1 %v4112_v49  ;;  %v528_v45 = vadd.f32 %v527_v40, %v4483_v63  ;;  %v4130_v54 = vld [vmem:[#allocation3 + $0x2ec] ss:$16 sps:$4 sm:$0xff]   ;;  %v681_v55 = vmax.f32 %v526_v39, 0.0  ;;  %v530_v56 = vadd.f32 %v529_v47, %v4488_v3  ;;  %v4140_v47 = vld [vmem:[#allocation3 + $0x328] ss:$16 sps:$4 sm:$0xff]  }
 0x11f   :  { %v343_v13 = vadd.f32 %v342_v8, %v4471_v1  ;;  %v344_v14 = vpop.f32.mrb[14].mxu0  ;;  %1696 = vmatprep.mubr.bf16.mxu0 %v799_v62  ;;  %2082 = vmatprep.mubr.bf16.mxu1 %v799_v62  ;;  %v533_v11 = vpop.f32.mrb[12].mxu1  ;;  %v4142_v31 = vld [vmem:[#allocation3 + $0x32c] ss:$16 sps:$4 sm:$0xff]  }
 0x120   :  { %v345_v16 = vadd.f32 %v344_v14, %v4467_v37  ;;  %v346_v17 = vpop.f32.mrb[15].mxu0  ;;  %1697 = vmatmul.mubr.bf16.gmra.mrb[72].mxu0 %v798_v58  ;;  %2083 = vmatmul.mubr.bf16.gmra.mrb[72].mxu1 %v798_v58  ;;  %v686_v24 = vmax.f32 %v341_v7, 0.0  ;;  %v685_v62 = vmax.f32 %v530_v56, 0.0  ;;  %v534_v14 = vadd.f32 %v533_v11, %v4483_v63  ;;  %v535_v15 = vpop.f32.mrb[13].mxu1 }
 0x121   :  { %v347_v19 = vadd.f32 %v346_v17, %v4471_v1  ;;  %1846 = vmatpush1.bf16.msra.mxu0 %v4107_v59  ;;  %2232 = vmatpush1.bf16.msra.mxu1 %v4110_v2  ;;  %v687_v29 = vmax.f32 %v343_v13, 0.0  ;;  %v684_v59 = vmax.f32 %v528_v45, 0.0  ;;  %v4125_v2 = vld [vmem:[#allocation3 + $0x2e0] ss:$16 sps:$4 sm:$0xff]   ;;  %v536_v18 = vadd.f32 %v535_v15, %v4488_v3  ;;  %v4151_v15 = vld [vmem:[#allocation3 + $0x364] ss:$16 sps:$4 sm:$0xff]  }
 0x122   :  { %v690_v25 = vmax.f32 %v345_v16, 0.0  ;;  %1847 = vmatprep.subr.bf16.mxu0 %v4115_v9  ;;  %2233 = vmatprep.subr.bf16.mxu1 %v4118_v10  ;;  %v4136_v9 = vld [vmem:[#allocation3 + $0x30c] ss:$16 sps:$4 sm:$0xff]   ;;  %v4525_v10 = vpack.c.bf16 %v685_v62, %v681_v55  ;;  %v4131_v17 = vld [vmem:[#allocation3 + $0x300] ss:$16 sps:$4 sm:$0xff]  }
 0x123   :  { %v691_v30 = vmax.f32 %v347_v19, 0.0  ;;  %v4523_v6 = vpack.c.bf16 %v684_v59, %v680_v44  ;;  %v537_v19 = vpop.f32.mrb[14].mxu1  ;;  %v689_v32 = vmax.f32 %v536_v18, 0.0  ;;  %v4137_v45 = vld [vmem:[#allocation3 + $0x320] ss:$16 sps:$4 sm:$0xff]  }
 0x124   :  { %v802_v35 = vpack.c.bf16 %v690_v25, %v686_v24  ;;  %v688_v24 = vmax.f32 %v534_v14, 0.0  ;;  %v538_v25 = vadd.f32 %v537_v19, %v4483_v63  ;;  %v4148_v55 = vld [vmem:[#allocation3 + $0x34c] ss:$16 sps:$4 sm:$0xff]  }
 0x125   :  { %v803_v41 = vpack.c.bf16 %v691_v30, %v687_v29  ;;  %v350_v42 = vpop.f32.mrb[16].mxu0  ;;  %1848 = vmatpush1.bf16.msra.mxu0 %v4113_v20  ;;  %2234 = vmatpush1.bf16.msra.mxu1 %v4116_v21  ;;  %v4139_v30 = vld [vmem:[#allocation3 + $0x324] ss:$16 sps:$4 sm:$0xff]  }
 0x126   :  { %v351_v48 = vadd.f32 %v350_v42, %v4467_v37  ;;  %v352_v49 = vpop.f32.mrb[17].mxu0  ;;  %1849 = vmatprep.subr.bf16.mxu0 %v4121_v22  ;;  %2235 = vmatprep.subr.bf16.mxu1 %v4124_v26  ;;  %v4134_v22 = vld [vmem:[#allocation3 + $0x308] ss:$16 sps:$4 sm:$0xff]   ;;  %v539_v26 = vpop.f32.mrb[15].mxu1  ;;  %v692_v40 = vmax.f32 %v538_v25, 0.0 }
 0x127   :  { %v353_v57 = vadd.f32 %v352_v49, %v4471_v1  ;;  %v354_v58 = vpop.f32.mrb[18].mxu0  ;;  %1706 = vmatprep.mubr.bf16.mxu0 %v803_v41  ;;  %2092 = vmatprep.mubr.bf16.mxu1 %v803_v41 }
 0x128   :  { %v355_v60 = vadd.f32 %v354_v58, %v4467_v37  ;;  %v356_v61 = vpop.f32.mrb[19].mxu0  ;;  %1707 = vmatmul.mubr.bf16.gmra.mrb[76].mxu0 %v802_v35  ;;  %2093 = vmatmul.mubr.bf16.gmra.mrb[76].mxu1 %v802_v35  ;;  %v694_v7 = vmax.f32 %v351_v48, 0.0  ;;  %v540_v35 = vadd.f32 %v539_v26, %v4488_v3  ;;  %v4145_v48 = vld [vmem:[#allocation3 + $0x344] ss:$16 sps:$4 sm:$0xff]   ;;  %v4535_v49 = vpack.c.bf16 %v692_v40, %v688_v24 }
 0x129   :  { %v357_v0 = vadd.f32 %v356_v61, %v4471_v1  ;;  %1850 = vmatpush1.bf16.msra.mxu0 %v4119_v38  ;;  %2236 = vmatpush1.bf16.msra.mxu1 %v4122_v43  ;;  %v695_v12 = vmax.f32 %v353_v57, 0.0  ;;  %v543_v57 = vpop.f32.mrb[16].mxu1 }
 0x12a   :  { %v698_v8 = vmax.f32 %v355_v60, 0.0  ;;  %1851 = vmatprep.subr.bf16.mxu0 %v4127_v53  ;;  %2237 = vmatprep.subr.bf16.mxu1 %v4130_v54  ;;  %v693_v43 = vmax.f32 %v540_v35, 0.0  ;;  %v544_v60 = vadd.f32 %v543_v57, %v4483_v63  ;;  %v545_v61 = vpop.f32.mrb[17].mxu1  ;;  %v4158_v57 = vld [vmem:[#allocation3 + $0x388] ss:$16 sps:$4 sm:$0xff]  }
 0x12b   :  { %v699_v13 = vmax.f32 %v357_v0, 0.0  ;;  %v4143_v0 = vld [vmem:[#allocation3 + $0x340] ss:$16 sps:$4 sm:$0xff]  }
 0x12c   :  { %v806_v16 = vpack.c.bf16 %v698_v8, %v694_v7  ;;  %v4537_v56 = vpack.c.bf16 %v693_v43, %v689_v32  ;;  %v4146_v8 = vld [vmem:[#allocation3 + $0x348] ss:$16 sps:$4 sm:$0xff]  }
 0x12d   :  { %v807_v20 = vpack.c.bf16 %v699_v13, %v695_v12  ;;  %v360_v21 = vpop.f32.mrb[20].mxu0  ;;  %1852 = vmatpush1.bf16.msra.mxu0 %v4125_v2  ;;  %2238 = vmatpush1.bf16.msra.mxu1 %v4128_v4  ;;  %v546_v2 = vadd.f32 %v545_v61, %v4488_v3  ;;  %v547_v4 = vpop.f32.mrb[18].mxu1 }
 0x12e   :  { %v361_v28 = vadd.f32 %v360_v21, %v4467_v37  ;;  %v362_v29 = vpop.f32.mrb[21].mxu0  ;;  %1853 = vmatprep.subr.bf16.mxu0 %v4133_v5  ;;  %2239 = vmatprep.subr.bf16.mxu1 %v4136_v9  ;;  %v696_v9 = vmax.f32 %v544_v60, 0.0  ;;  %v548_v11 = vadd.f32 %v547_v4, %v4483_v63  ;;  %v549_v12 = vpop.f32.mrb[19].mxu1 }
 0x12f   :  { %v363_v38 = vadd.f32 %v362_v29, %v4471_v1  ;;  %v364_v39 = vpop.f32.mrb[22].mxu0  ;;  %1716 = vmatprep.mubr.bf16.mxu0 %v807_v20  ;;  %2102 = vmatprep.mubr.bf16.mxu1 %v807_v20  ;;  %v550_v18 = vadd.f32 %v549_v12, %v4488_v3  ;;  %v4152_v29 = vld [vmem:[#allocation3 + $0x368] ss:$16 sps:$4 sm:$0xff]   ;;  %v553_v40 = vpop.f32.mrb[20].mxu1 }
 0x130   :  { %v365_v41 = vadd.f32 %v364_v39, %v4467_v37  ;;  %v366_v42 = vpop.f32.mrb[23].mxu0  ;;  %1717 = vmatmul.mubr.bf16.gmra.mrb[80].mxu0 %v806_v16  ;;  %2103 = vmatmul.mubr.bf16.gmra.mrb[80].mxu1 %v806_v16  ;;  %v702_v53 = vmax.f32 %v361_v28, 0.0  ;;  %v4154_v16 = vld [vmem:[#allocation3 + $0x36c] ss:$16 sps:$4 sm:$0xff]   ;;  %v700_v21 = vmax.f32 %v548_v11, 0.0  ;;  %v554_v43 = vadd.f32 %v553_v40, %v4483_v63 }
 0x131   :  { %v367_v44 = vadd.f32 %v366_v42, %v4471_v1  ;;  %1854 = vmatpush1.bf16.msra.mxu0 %v4131_v17  ;;  %2240 = vmatpush1.bf16.msra.mxu1 %v4134_v22  ;;  %v703_v58 = vmax.f32 %v363_v38, 0.0  ;;  %v697_v17 = vmax.f32 %v546_v2, 0.0  ;;  %v701_v25 = vmax.f32 %v550_v18, 0.0  ;;  %v4149_v28 = vld [vmem:[#allocation3 + $0x360] ss:$16 sps:$4 sm:$0xff]  }
 0x132   :  { %v706_v54 = vmax.f32 %v365_v41, 0.0  ;;  %1855 = vmatprep.subr.bf16.mxu0 %v4139_v30  ;;  %2241 = vmatprep.subr.bf16.mxu1 %v4142_v31  ;;  %v4157_v30 = vld [vmem:[#allocation3 + $0x384] ss:$16 sps:$4 sm:$0xff]   ;;  %v4547_v31 = vpack.c.bf16 %v700_v21, %v696_v9  ;;  %v4160_v38 = vld [vmem:[#allocation3 + $0x38c] ss:$16 sps:$4 sm:$0xff]  }
 0x133   :  { %v707_v59 = vmax.f32 %v367_v44, 0.0  ;;  %v4549_v39 = vpack.c.bf16 %v701_v25, %v697_v17  ;;  %v555_v44 = vpop.f32.mrb[21].mxu1  ;;  %v4166_v2 = vld [vmem:[#allocation3 + $0x3ac] ss:$16 sps:$4 sm:$0xff]   ;;  %v4169_v17 = vld [vmem:[#allocation3 + $0x3c4] ss:$16 sps:$4 sm:$0xff]  }
 0x134   :  { %v810_v62 = vpack.c.bf16 %v706_v54, %v702_v53  ;;  %v557_v53 = vpop.f32.mrb[22].mxu1  ;;  %v4172_v21 = vld [vmem:[#allocation3 + $0x3cc] ss:$16 sps:$4 sm:$0xff]  }
 0x135   :  { %v811_v5 = vpack.c.bf16 %v707_v59, %v703_v58  ;;  %v370_v7 = vpop.f32.mrb[24].mxu0  ;;  %1856 = vmatpush1.bf16.msra.mxu0 %v4137_v45  ;;  %2242 = vmatpush1.bf16.msra.mxu1 %v4140_v47  ;;  %v4155_v47 = vld [vmem:[#allocation3 + $0x380] ss:$16 sps:$4 sm:$0xff]   ;;  %v704_v58 = vmax.f32 %v554_v43, 0.0  ;;  %v558_v59 = vadd.f32 %v557_v53, %v4483_v63  ;;  %v559_v60 = vpop.f32.mrb[23].mxu1 }
 0x136   :  { %v371_v13 = vadd.f32 %v370_v7, %v4467_v37  ;;  %v372_v14 = vpop.f32.mrb[25].mxu0  ;;  %1857 = vmatprep.subr.bf16.mxu0 %v4145_v48  ;;  %2243 = vmatprep.subr.bf16.mxu1 %v4148_v55  ;;  %v556_v48 = vadd.f32 %v555_v44, %v4488_v3  ;;  %v4175_v53 = vld [vmem:[#allocation3 + $0x3e4] ss:$16 sps:$4 sm:$0xff]  }
 0x137   :  { %v373_v19 = vadd.f32 %v372_v14, %v4471_v1  ;;  %v374_v20 = vpop.f32.mrb[26].mxu0  ;;  %1726 = vmatprep.mubr.bf16.mxu0 %v811_v5  ;;  %2112 = vmatprep.mubr.bf16.mxu1 %v811_v5  ;;  %v560_v5 = vadd.f32 %v559_v60, %v4488_v3  ;;  %v708_v9 = vmax.f32 %v558_v59, 0.0 }
 0x138   :  { %v375_v22 = vadd.f32 %v374_v20, %v4467_v37  ;;  %v376_v24 = vpop.f32.mrb[27].mxu0  ;;  %1727 = vmatmul.mubr.bf16.gmra.mrb[84].mxu0 %v810_v62  ;;  %2113 = vmatmul.mubr.bf16.gmra.mrb[84].mxu1 %v810_v62  ;;  %v710_v32 = vmax.f32 %v371_v13, 0.0  ;;  %v705_v4 = vmax.f32 %v556_v48, 0.0 }
 0x139   :  { %v377_v26 = vadd.f32 %v376_v24, %v4471_v1  ;;  %1858 = vmatpush1.bf16.msra.mxu0 %v4143_v0  ;;  %2244 = vmatpush1.bf16.msra.mxu1 %v4146_v8  ;;  %v711_v41 = vmax.f32 %v373_v19, 0.0  ;;  %v4163_v0 = vld [vmem:[#allocation3 + $0x3a4] ss:$16 sps:$4 sm:$0xff]   ;;  %v709_v13 = vmax.f32 %v560_v5, 0.0  ;;  %v4559_v18 = vpack.c.bf16 %v708_v9, %v704_v58  ;;  %v563_v24 = vpop.f32.mrb[24].mxu1 }
 0x13a   :  { %v714_v35 = vmax.f32 %v375_v22, 0.0  ;;  %1859 = vmatprep.subr.bf16.mxu0 %v4151_v15  ;;  %2245 = vmatprep.subr.bf16.mxu1 %v4154_v16  ;;  %v4161_v15 = vld [vmem:[#allocation3 + $0x3a0] ss:$16 sps:$4 sm:$0xff]   ;;  %v4164_v16 = vld [vmem:[#allocation3 + $0x3a8] ss:$16 sps:$4 sm:$0xff]  }
 0x13b   :  { %v715_v42 = vmax.f32 %v377_v26, 0.0  ;;  %v4561_v22 = vpack.c.bf16 %v709_v13, %v705_v4  ;;  %v4173_v4 = vld [vmem:[#allocation3 + $0x3e0] ss:$16 sps:$4 sm:$0xff]   ;;  %v4176_v5 = vld [vmem:[#allocation3 + $0x3e8] ss:$16 sps:$4 sm:$0xff]  }
 0x13c   :  { %v814_v45 = vpack.c.bf16 %v714_v35, %v710_v32  ;;  %v4167_v32 = vld [vmem:[#allocation3 + $0x3c0] ss:$16 sps:$4 sm:$0xff]  }
 0x13d   :  { %v815_v54 = vpack.c.bf16 %v715_v42, %v711_v41  ;;  %v380_v55 = vpop.f32.mrb[28].mxu0  ;;  %1860 = vmatpush1.bf16.msra.mxu0 %v4149_v28  ;;  %2246 = vmatpush1.bf16.msra.mxu1 %v4152_v29  ;;  %v564_v28 = vadd.f32 %v563_v24, %v4483_v63  ;;  %v565_v29 = vpop.f32.mrb[25].mxu1  ;;  %v4170_v42 = vld [vmem:[#allocation3 + $0x3c8] ss:$16 sps:$4 sm:$0xff]  }
 0x13e   :  { %v381_v61 = vadd.f32 %v380_v55, %v4467_v37  ;;  %v382_v62 = vpop.f32.mrb[29].mxu0  ;;  %1861 = vmatprep.subr.bf16.mxu0 %v4157_v30  ;;  %2247 = vmatprep.subr.bf16.mxu1 %v4160_v38  ;;  %v566_v35 = vadd.f32 %v565_v29, %v4488_v3  ;;  %v567_v38 = vpop.f32.mrb[26].mxu1 }
 0x13f   :  { %v383_v7 = vadd.f32 %v382_v62, %v4471_v1  ;;  %v384_v8 = vpop.f32.mrb[30].mxu0  ;;  %1736 = vmatprep.mubr.bf16.mxu0 %v815_v54  ;;  %2122 = vmatprep.mubr.bf16.mxu1 %v815_v54  ;;  %v712_v43 = vmax.f32 %v564_v28, 0.0  ;;  %v568_v44 = vadd.f32 %v567_v38, %v4483_v63  ;;  %v4178_v54 = vld [vmem:[#allocation3 + $0x3ec] ss:$16 sps:$4 sm:$0xff]  }
 0x140   :  { %v385_v11 = vadd.f32 %v384_v8, %v4467_v37  ;;  %v386_v12 = vpop.f32.mrb[31].mxu0  ;;  %1737 = vmatmul.mubr.bf16.gmra.mrb[88].mxu0 %v814_v45  ;;  %2123 = vmatmul.mubr.bf16.gmra.mrb[88].mxu1 %v814_v45  ;;  %v718_v19 = vmax.f32 %v381_v61, 0.0  ;;  %v569_v45 = vpop.f32.mrb[27].mxu1  ;;  %v713_v55 = vmax.f32 %v566_v35, 0.0 }
 0x141   :  { %v387_v14 = vadd.f32 %v386_v12, %v4471_v1  ;;  %1862 = vmatpush1.bf16.msra.mxu0 %v4155_v47  ;;  %2248 = vmatpush1.bf16.msra.mxu1 %v4158_v57  ;;  %v719_v25 = vmax.f32 %v383_v7, 0.0  ;;  %v570_v57 = vadd.f32 %v569_v45, %v4488_v3  ;;  %v716_v60 = vmax.f32 %v568_v44, 0.0  ;;  %v573_v12 = vpop.f32.mrb[28].mxu1 }
 0x142   :  { %v722_v20 = vmax.f32 %v385_v11, 0.0  ;;  %1863 = vmatprep.subr.bf16.mxu0 %v4163_v0  ;;  %2249 = vmatprep.subr.bf16.mxu1 %v4166_v2 }
 0x143   :  { %v723_v26 = vmax.f32 %v387_v14, 0.0  ;;  %v717_v0 = vmax.f32 %v570_v57, 0.0  ;;  %v4571_v7 = vpack.c.bf16 %v716_v60, %v712_v43 }
 0x144   :  { %v818_v30 = vpack.c.bf16 %v722_v20, %v718_v19 }
 0x145   :  { %v819_v40 = vpack.c.bf16 %v723_v26, %v719_v25  ;;  %v390_v41 = vpop.f32.mrb[32].mxu0  ;;  %1864 = vmatpush1.bf16.msra.mxu0 %v4161_v15  ;;  %2250 = vmatpush1.bf16.msra.mxu1 %v4164_v16  ;;  %v4573_v11 = vpack.c.bf16 %v717_v0, %v713_v55  ;;  %v574_v15 = vadd.f32 %v573_v12, %v4483_v63  ;;  %v575_v16 = vpop.f32.mrb[29].mxu1 }
 0x146   :  { %v391_v47 = vadd.f32 %v390_v41, %v4467_v37  ;;  %v392_v48 = vpop.f32.mrb[33].mxu0  ;;  %1865 = vmatprep.subr.bf16.mxu0 %v4169_v17  ;;  %2251 = vmatprep.subr.bf16.mxu1 %v4172_v21  ;;  %v576_v19 = vadd.f32 %v575_v16, %v4488_v3  ;;  %v577_v20 = vpop.f32.mrb[30].mxu1 }
 0x147   :  { %v393_v58 = vadd.f32 %v392_v48, %v4471_v1  ;;  %v394_v59 = vpop.f32.mrb[34].mxu0  ;;  %1746 = vmatprep.mubr.bf16.mxu0 %v819_v40  ;;  %2132 = vmatprep.mubr.bf16.mxu1 %v819_v40  ;;  %v720_v25 = vmax.f32 %v574_v15, 0.0  ;;  %v578_v26 = vadd.f32 %v577_v20, %v4483_v63  ;;  %v579_v28 = vpop.f32.mrb[31].mxu1 }
 0x148   :  { %v395_v61 = vadd.f32 %v394_v59, %v4467_v37  ;;  %v396_v62 = vpop.f32.mrb[35].mxu0  ;;  %1747 = vmatmul.mubr.bf16.gmra.mrb[92].mxu0 %v818_v30  ;;  %2133 = vmatmul.mubr.bf16.gmra.mrb[92].mxu1 %v818_v30  ;;  %v726_v8 = vmax.f32 %v391_v47, 0.0  ;;  %v580_v35 = vadd.f32 %v579_v28, %v4488_v3  ;;  %v583_v55 = vpop.f32.mrb[32].mxu1 }
 0x149   :  { %v397_v2 = vadd.f32 %v396_v62, %v4471_v1  ;;  %1866 = vmatpush1.bf16.msra.mxu0 %v4167_v32  ;;  %2252 = vmatpush1.bf16.msra.mxu1 %v4170_v42  ;;  %v727_v13 = vmax.f32 %v393_v58, 0.0  ;;  %v721_v32 = vmax.f32 %v576_v19, 0.0  ;;  %v724_v41 = vmax.f32 %v578_v26, 0.0  ;;  %v585_v60 = vpop.f32.mrb[33].mxu1 }
 0x14a   :  { %v730_v9 = vmax.f32 %v395_v61, 0.0  ;;  %1867 = vmatprep.subr.bf16.mxu0 %v4175_v53  ;;  %2253 = vmatprep.subr.bf16.mxu1 %v4178_v54  ;;  %v725_v44 = vmax.f32 %v580_v35, 0.0  ;;  %v584_v59 = vadd.f32 %v583_v55, %v4483_v63  ;;  %v586_v62 = vadd.f32 %v585_v60, %v4488_v3  ;;  %v587_v0 = vpop.f32.mrb[34].mxu1 }
 0x14b   :  { %v731_v14 = vmax.f32 %v397_v2, 0.0  ;;  %v4583_v47 = vpack.c.bf16 %v724_v41, %v720_v25 }
 0x14c   :  { %v822_v17 = vpack.c.bf16 %v730_v9, %v726_v8  ;;  %v4585_v54 = vpack.c.bf16 %v725_v44, %v721_v32  ;;  %v588_v8 = vadd.f32 %v587_v0, %v4483_v63  ;;  %v589_v9 = vpop.f32.mrb[35].mxu1 }
 0x14d   :  { %v823_v21 = vpack.c.bf16 %v731_v14, %v727_v13  ;;  %v400_v24 = vpop.f32.mrb[36].mxu0  ;;  %1868 = vmatpush1.bf16.msra.mxu0 %v4173_v4  ;;  %2254 = vmatpush1.bf16.msra.mxu1 %v4176_v5  ;;  %v728_v5 = vmax.f32 %v584_v59, 0.0  ;;  %v729_v14 = vmax.f32 %v586_v62, 0.0  ;;  %v590_v15 = vadd.f32 %v589_v9, %v4488_v3 }
 0x14e   :  { %v401_v29 = vadd.f32 %v400_v24, %v4467_v37  ;;  %v402_v30 = vpop.f32.mrb[37].mxu0  ;;  %v732_v19 = vmax.f32 %v588_v8, 0.0 }
 0x14f   :  { %v403_v38 = vadd.f32 %v402_v30, %v4471_v1  ;;  %v404_v40 = vpop.f32.mrb[38].mxu0  ;;  %1756 = vmatprep.mubr.bf16.mxu0 %v823_v21  ;;  %2142 = vmatprep.mubr.bf16.mxu1 %v823_v21  ;;  %v733_v24 = vmax.f32 %v590_v15, 0.0  ;;  %v593_v32 = vpop.f32.mrb[36].mxu1 }
 0x150   :  { %v405_v42 = vadd.f32 %v404_v40, %v4467_v37  ;;  %v406_v43 = vpop.f32.mrb[39].mxu0  ;;  %1757 = vmatmul.mubr.bf16.gmra.mrb[96].mxu0 %v822_v17  ;;  %2143 = vmatmul.mubr.bf16.gmra.mrb[96].mxu1 %v822_v17  ;;  %v734_v48 = vmax.f32 %v401_v29, 0.0  ;;  %v4595_v26 = vpack.c.bf16 %v732_v19, %v728_v5  ;;  %v594_v40 = vadd.f32 %v593_v32, %v4483_v63  ;;  %v595_v41 = vpop.f32.mrb[37].mxu1 }
 0x151   :  { %v407_v45 = vadd.f32 %v406_v43, %v4471_v1  ;;  %v735_v57 = vmax.f32 %v403_v38, 0.0  ;;  %v4597_v30 = vpack.c.bf16 %v733_v24, %v729_v14  ;;  %v596_v43 = vadd.f32 %v595_v41, %v4488_v3  ;;  %v597_v44 = vpop.f32.mrb[38].mxu1 }
 0x152   :  { %v738_v53 = vmax.f32 %v405_v42, 0.0  ;;  %v598_v55 = vadd.f32 %v597_v44, %v4483_v63 }
 0x153   :  { %v739_v58 = vmax.f32 %v407_v45, 0.0  ;;  %v737_v60 = vmax.f32 %v596_v43, 0.0 }
 0x154   :  { %v826_v61 = vpack.c.bf16 %v738_v53, %v734_v48  ;;  %v736_v53 = vmax.f32 %v594_v40, 0.0 }
 0x155   :  { %v827_v2 = vpack.c.bf16 %v739_v58, %v735_v57  ;;  %v410_v4 = vpop.f32.mrb[40].mxu0  ;;  %v599_v57 = vpop.f32.mrb[39].mxu1 }
 0x156   :  { %v411_v12 = vadd.f32 %v410_v4, %v4467_v37  ;;  %v412_v13 = vpop.f32.mrb[41].mxu0 }
 0x157   :  { %v413_v16 = vadd.f32 %v412_v13, %v4471_v1  ;;  %v414_v17 = vpop.f32.mrb[42].mxu0  ;;  %1766 = vmatprep.mubr.bf16.mxu0 %v827_v2  ;;  %2152 = vmatprep.mubr.bf16.mxu1 %v827_v2  ;;  %v740_v2 = vmax.f32 %v598_v55, 0.0 }
 0x158   :  { %v415_v20 = vadd.f32 %v414_v17, %v4467_v37  ;;  %v416_v21 = vpop.f32.mrb[43].mxu0  ;;  %1767 = vmatmul.mubr.bf16.gmra.mrb[100].mxu0 %v826_v61  ;;  %2153 = vmatmul.mubr.bf16.gmra.mrb[100].mxu1 %v826_v61  ;;  %v742_v28 = vmax.f32 %v411_v12, 0.0  ;;  %v600_v61 = vadd.f32 %v599_v57, %v4488_v3 }
 0x159   :  { %v417_v25 = vadd.f32 %v416_v21, %v4471_v1  ;;  %v743_v35 = vmax.f32 %v413_v16, 0.0  ;;  %v4607_v12 = vpack.c.bf16 %v740_v2, %v736_v53  ;;  %v603_v16 = vpop.f32.mrb[40].mxu1 }
 0x15a   :  { %v746_v29 = vmax.f32 %v415_v20, 0.0  ;;  %v741_v8 = vmax.f32 %v600_v61, 0.0  ;;  %v604_v20 = vadd.f32 %v603_v16, %v4483_v63  ;;  %v605_v21 = vpop.f32.mrb[41].mxu1  ;;  %v4179_v61 = vld [vmem:[#allocation5 + $0x40] sm:$0xff]  }
 0x15b   :  { %v747_v38 = vmax.f32 %v417_v25, 0.0  ;;  %v606_v25 = vadd.f32 %v605_v21, %v4488_v3  ;;  %3477 = vmatprep.subr.bf16.mxu0 %v4179_v61 }
 0x15c   :  { %v830_v42 = vpack.c.bf16 %v746_v29, %v742_v28  ;;  %v4609_v15 = vpack.c.bf16 %v741_v8, %v737_v60  ;;  %v607_v28 = vpop.f32.mrb[42].mxu1 }
 0x15d   :  { %v831_v45 = vpack.c.bf16 %v747_v38, %v743_v35  ;;  %v420_v48 = vpop.f32.mrb[44].mxu0  ;;  %v744_v35 = vmax.f32 %v604_v20, 0.0  ;;  %v608_v38 = vadd.f32 %v607_v28, %v4483_v63  ;;  %v609_v40 = vpop.f32.mrb[43].mxu1  ;;  %v745_v43 = vmax.f32 %v606_v25, 0.0 }
 0x15e   :  { %v421_v58 = vadd.f32 %v420_v48, %v4467_v37  ;;  %v422_v59 = vpop.f32.mrb[45].mxu0  ;;  %v610_v44 = vadd.f32 %v609_v40, %v4488_v3 }
 0x15f   :  { %v423_v62 = vadd.f32 %v422_v59, %v4471_v1  ;;  %v424_v0 = vpop.f32.mrb[46].mxu0  ;;  %1776 = vmatprep.mubr.bf16.mxu0 %v831_v45  ;;  %2162 = vmatprep.mubr.bf16.mxu1 %v831_v45  ;;  %v748_v53 = vmax.f32 %v608_v38, 0.0 }
 0x160   :  { %v425_v4 = vadd.f32 %v424_v0, %v4467_v37  ;;  %v426_v5 = vpop.f32.mrb[47].mxu0  ;;  %1777 = vmatmul.mubr.bf16.gmra.mrb[104].mxu0 %v830_v42  ;;  %2163 = vmatmul.mubr.bf16.gmra.mrb[104].mxu1 %v830_v42  ;;  %v750_v13 = vmax.f32 %v421_v58, 0.0  ;;  %v749_v58 = vmax.f32 %v610_v44, 0.0 }
 0x161   :  { %v427_v9 = vadd.f32 %v426_v5, %v4471_v1  ;;  %v751_v17 = vmax.f32 %v423_v62, 0.0  ;;  %v4619_v60 = vpack.c.bf16 %v748_v53, %v744_v35  ;;  %v4180_v62 = vld [vmem:[#allocation5 + $0xc0] sm:$0xff]   ;;  %v613_v5 = vpop.f32.mrb[44].mxu1 }
 0x162   :  { %v754_v14 = vmax.f32 %v425_v4, 0.0  ;;  %v4621_v4 = vpack.c.bf16 %v749_v58, %v745_v43  ;;  %3589 = vmatprep.subr.bf16.mxu1 %v4180_v62 }
 0x163   :  { %v755_v19 = vmax.f32 %v427_v9, 0.0 }
 0x164   :  { %v834_v24 = vpack.c.bf16 %v754_v14, %v750_v13  ;;  %v614_v13 = vadd.f32 %v613_v5, %v4483_v63  ;;  %v615_v14 = vpop.f32.mrb[45].mxu1 }
 0x165   :  { %v835_v29 = vpack.c.bf16 %v755_v19, %v751_v17  ;;  %v430_v32 = vpop.f32.mrb[48].mxu0  ;;  %v616_v17 = vadd.f32 %v615_v14, %v4488_v3  ;;  %v617_v19 = vpop.f32.mrb[46].mxu1 }
 0x166   :  { %v431_v41 = vadd.f32 %v430_v32, %v4467_v37  ;;  %v432_v42 = vpop.f32.mrb[49].mxu0  ;;  %v618_v25 = vadd.f32 %v617_v19, %v4483_v63  ;;  %v619_v28 = vpop.f32.mrb[47].mxu1 }
 0x167   :  { %v433_v45 = vadd.f32 %v432_v42, %v4471_v1  ;;  %v434_v48 = vpop.f32.mrb[50].mxu0  ;;  %1786 = vmatprep.mubr.bf16.mxu0 %v835_v29  ;;  %2172 = vmatprep.mubr.bf16.mxu1 %v835_v29  ;;  %v753_v35 = vmax.f32 %v616_v17, 0.0  ;;  %v620_v38 = vadd.f32 %v619_v28, %v4488_v3 }
 0x168   :  { %v435_v55 = vadd.f32 %v434_v48, %v4467_v37  ;;  %v436_v57 = vpop.f32.mrb[51].mxu0  ;;  %1787 = vmatmul.mubr.bf16.gmra.mrb[108].mxu0 %v834_v24  ;;  %2173 = vmatmul.mubr.bf16.gmra.mrb[108].mxu1 %v834_v24  ;;  %v758_v0 = vmax.f32 %v431_v41, 0.0  ;;  %v752_v24 = vmax.f32 %v614_v13, 0.0  ;;  %v756_v42 = vmax.f32 %v618_v25, 0.0 }
 0x169   :  { %v437_v59 = vadd.f32 %v436_v57, %v4471_v1  ;;  %v759_v8 = vmax.f32 %v433_v45, 0.0  ;;  %v757_v45 = vmax.f32 %v620_v38, 0.0 }
 0x16a   :  { %v762_v2 = vmax.f32 %v435_v55, 0.0  ;;  %v4631_v53 = vpack.c.bf16 %v756_v42, %v752_v24 }
 0x16b   :  { %v763_v9 = vmax.f32 %v437_v59, 0.0  ;;  %v4633_v58 = vpack.c.bf16 %v757_v45, %v753_v35  ;;  %v623_v59 = vpop.f32.mrb[48].mxu1 }
 0x16c   :  { %v838_v16 = vpack.c.bf16 %v762_v2, %v758_v0  ;;  %v624_v0 = vadd.f32 %v623_v59, %v4483_v63  ;;  %v625_v2 = vpop.f32.mrb[49].mxu1 }
 0x16d   :  { %v839_v20 = vpack.c.bf16 %v763_v9, %v759_v8  ;;  %v440_v21 = vpop.f32.mrb[52].mxu0  ;;  %v626_v8 = vadd.f32 %v625_v2, %v4488_v3  ;;  %v627_v9 = vpop.f32.mrb[50].mxu1 }
 0x16e   :  { %v441_v29 = vadd.f32 %v440_v21, %v4467_v37  ;;  %v442_v32 = vpop.f32.mrb[53].mxu0  ;;  %v628_v17 = vadd.f32 %v627_v9, %v4483_v63  ;;  %v629_v19 = vpop.f32.mrb[51].mxu1 }
 0x16f   :  { %v443_v40 = vadd.f32 %v442_v32, %v4471_v1  ;;  %v444_v41 = vpop.f32.mrb[54].mxu0  ;;  %1796 = vmatprep.mubr.bf16.mxu0 %v839_v20  ;;  %2182 = vmatprep.mubr.bf16.mxu1 %v839_v20  ;;  %v761_v24 = vmax.f32 %v626_v8, 0.0  ;;  %v630_v25 = vadd.f32 %v629_v19, %v4488_v3 }
 0x170   :  { %v445_v43 = vadd.f32 %v444_v41, %v4467_v37  ;;  %v446_v44 = vpop.f32.mrb[55].mxu0  ;;  %1797 = vmatmul.mubr.bf16.gmra.mrb[112].mxu0 %v838_v16  ;;  %2183 = vmatmul.mubr.bf16.gmra.mrb[112].mxu1 %v838_v16  ;;  %v766_v55 = vmax.f32 %v441_v29, 0.0  ;;  %v760_v16 = vmax.f32 %v624_v0, 0.0  ;;  %v764_v32 = vmax.f32 %v628_v17, 0.0 }
 0x171   :  { %v447_v48 = vadd.f32 %v446_v44, %v4471_v1  ;;  %v767_v61 = vmax.f32 %v443_v40, 0.0  ;;  %v765_v40 = vmax.f32 %v630_v25, 0.0 }
 0x172   :  { %v770_v57 = vmax.f32 %v445_v43, 0.0  ;;  %v4643_v42 = vpack.c.bf16 %v764_v32, %v760_v16 }
 0x173   :  { %v771_v62 = vmax.f32 %v447_v48, 0.0  ;;  %v4645_v45 = vpack.c.bf16 %v765_v40, %v761_v24  ;;  %v633_v48 = vpop.f32.mrb[52].mxu1 }
 0x174   :  { %v842_v5 = vpack.c.bf16 %v770_v57, %v766_v55  ;;  %v634_v59 = vadd.f32 %v633_v48, %v4483_v63 }
 0x175   :  { %v843_v13 = vpack.c.bf16 %v771_v62, %v767_v61  ;;  %v450_v14 = vpop.f32.mrb[56].mxu0  ;;  %v635_v61 = vpop.f32.mrb[53].mxu1 }
 0x176   :  { %v451_v20 = vadd.f32 %v450_v14, %v4467_v37  ;;  %v452_v21 = vpop.f32.mrb[57].mxu0  ;;  %v636_v0 = vadd.f32 %v635_v61, %v4488_v3  ;;  %v637_v2 = vpop.f32.mrb[54].mxu1  ;;  %v768_v9 = vmax.f32 %v634_v59, 0.0 }
 0x177   :  { %v453_v28 = vadd.f32 %v452_v21, %v4471_v1  ;;  %v454_v29 = vpop.f32.mrb[58].mxu0  ;;  %1806 = vmatprep.mubr.bf16.mxu0 %v843_v13  ;;  %2192 = vmatprep.mubr.bf16.mxu1 %v843_v13  ;;  %v638_v13 = vadd.f32 %v637_v2, %v4483_v63  ;;  %v639_v14 = vpop.f32.mrb[55].mxu1 }
 0x178   :  { %v455_v35 = vadd.f32 %v454_v29, %v4467_v37  ;;  %v456_v38 = vpop.f32.mrb[59].mxu0  ;;  %1807 = vmatmul.mubr.bf16.gmra.mrb[116].mxu0 %v842_v5  ;;  %2193 = vmatmul.mubr.bf16.gmra.mrb[116].mxu1 %v842_v5  ;;  %v774_v43 = vmax.f32 %v451_v20, 0.0  ;;  %v769_v19 = vmax.f32 %v636_v0, 0.0  ;;  %v640_v20 = vadd.f32 %v639_v14, %v4488_v3 }
 0x179   :  { %v457_v41 = vadd.f32 %v456_v38, %v4471_v1  ;;  %v775_v55 = vmax.f32 %v453_v28, 0.0  ;;  %v772_v25 = vmax.f32 %v638_v13, 0.0 }
 0x17a   :  { %v778_v44 = vmax.f32 %v455_v35, 0.0  ;;  %v773_v32 = vmax.f32 %v640_v20, 0.0 }
 0x17b   :  { %v779_v57 = vmax.f32 %v457_v41, 0.0  ;;  %v4655_v38 = vpack.c.bf16 %v772_v25, %v768_v9 }
 0x17c   :  { %v846_v62 = vpack.c.bf16 %v778_v44, %v774_v43  ;;  %v4657_v43 = vpack.c.bf16 %v773_v32, %v769_v19  ;;  %v643_v44 = vpop.f32.mrb[56].mxu1 }
 0x17d   :  { %v847_v5 = vpack.c.bf16 %v779_v57, %v775_v55  ;;  %v460_v8 = vpop.f32.mrb[60].mxu0  ;;  %v644_v57 = vadd.f32 %v643_v44, %v4483_v63  ;;  %v645_v59 = vpop.f32.mrb[57].mxu1 }
 0x17e   :  { %v461_v16 = vadd.f32 %v460_v8, %v4467_v37  ;;  %v462_v17 = vpop.f32.mrb[61].mxu0  ;;  %v647_v0 = vpop.f32.mrb[58].mxu1 }
 0x17f   :  { %v463_v21 = vadd.f32 %v462_v17, %v4471_v1  ;;  %v464_v24 = vpop.f32.mrb[62].mxu0  ;;  %1816 = vmatprep.mubr.bf16.mxu0 %v847_v5  ;;  %2202 = vmatprep.mubr.bf16.mxu1 %v847_v5  ;;  %v776_v2 = vmax.f32 %v644_v57, 0.0  ;;  %v649_v5 = vpop.f32.mrb[59].mxu1 }
 0x180   :  { %v465_v28 = vadd.f32 %v464_v24, %v4467_v37  ;;  %v466_v29 = vpop.f32.mrb[63].mxu0  ;;  %1817 = vmatmul.mubr.bf16.gmra.mrb[120].mxu0 %v846_v62  ;;  %2203 = vmatmul.mubr.bf16.gmra.mrb[120].mxu1 %v846_v62  ;;  %v782_v40 = vmax.f32 %v461_v16, 0.0  ;;  %v646_v37 = vadd.f32 %v645_v59, %v4488_v3  ;;  %v650_v9 = vadd.f32 %v649_v5, %v4488_v3  ;;  %v653_v19 = vpop.f32.mrb[60].mxu1  ;;  %v4194_v5 = vld [vmem:[#allocation5 + $0x98] sm:$0xff]  }
 0x181   :  { %v467_v35 = vadd.f32 %v466_v29, %v4471_v1  ;;  %v783_v48 = vmax.f32 %v463_v21, 0.0  ;;  %v648_v1 = vadd.f32 %v647_v0, %v4483_v63  ;;  %v654_v20 = vadd.f32 %v653_v19, %v4483_v63  ;;  %v655_v21 = vpop.f32.mrb[61].mxu1  ;;  %v4188_v0 = vld [vmem:[#allocation5 + $0xd0] sm:$0xff]   ;;  %v4199_v19 = vld [vmem:[#allocation5 + $0x68] sm:$0xff]  }
 0x182   :  { %v786_v41 = vmax.f32 %v465_v28, 0.0  ;;  %v777_v8 = vmax.f32 %v646_v37, 0.0  ;;  %v781_v14 = vmax.f32 %v650_v9, 0.0  ;;  %v656_v24 = vadd.f32 %v655_v21, %v4488_v3  ;;  %v657_v25 = vpop.f32.mrb[62].mxu1  ;;  %v4187_v37 = vld [vmem:[#allocation5 + $0x50] sm:$0xff]   ;;  %v4196_v9 = vld [vmem:[#allocation5 + $0xe0] sm:$0xff]  }
 0x183   :  { %v787_v55 = vmax.f32 %v467_v35, 0.0  ;;  %v780_v13 = vmax.f32 %v648_v1, 0.0  ;;  %v784_v28 = vmax.f32 %v654_v20, 0.0  ;;  %v658_v29 = vadd.f32 %v657_v25, %v4483_v63  ;;  %v659_v32 = vpop.f32.mrb[63].mxu1  ;;  %v4193_v1 = vld [vmem:[#allocation5 + $0x18] sm:$0xff]   ;;  %v4202_v20 = vld [vmem:[#allocation5 + $0xa8] sm:$0xff]  }
 0x184   :  { %v850_v61 = vpack.c.bf16 %v786_v41, %v782_v40  ;;  %v4667_v17 = vpack.c.bf16 %v781_v14, %v777_v8  ;;  %v785_v35 = vmax.f32 %v656_v24, 0.0  ;;  %v660_v40 = vadd.f32 %v659_v32, %v4488_v3  ;;  %v4181_v41 = vld [vmem:[#allocation5] sm:$0xff]   ;;  %v4185_v3 = vld [vmem:[#allocation5 + $0x8] sm:$0xff]   ;;  %v4203_v21 = vld [vmem:[#allocation5 + $0x70] sm:$0xff]  }
 0x185   :  { %v851_v62 = vpack.c.bf16 %v787_v55, %v783_v48  ;;  %v4665_v16 = vpack.c.bf16 %v780_v13, %v776_v2  ;;  %v788_v44 = vmax.f32 %v658_v29, 0.0  ;;  %v4183_v48 = vld [vmem:[#allocation5 + $0x48] sm:$0xff]   ;;  %v4191_v2 = vld [vmem:[#allocation5 + $0x58] sm:$0xff]   ;;  %v4195_v8 = vld [vmem:[#allocation5 + $0x60] sm:$0xff]  }
 0x186   :  { %v4184_v55 = vld [vmem:[#allocation5 + $0xc8] sm:$0xff]   ;;  %v789_v57 = vmax.f32 %v660_v40, 0.0  ;;  %v4197_v13 = vld [vmem:[#allocation5 + $0x20] sm:$0xff]   ;;  %v4204_v24 = vld [vmem:[#allocation5 + $0xf0] sm:$0xff]  }
 0x187   :  { %1826 = vmatprep.mubr.bf16.mxu0 %v851_v62  ;;  %2212 = vmatprep.mubr.bf16.mxu1 %v851_v62  ;;  %v4677_v59 = vpack.c.bf16 %v788_v44, %v784_v28  ;;  %v4190_v62 = vld [vmem:[#allocation5 + $0x90] sm:$0xff]   ;;  %v4198_v14 = vld [vmem:[#allocation5 + $0xa0] sm:$0xff]   ;;  %v4207_v29 = vld [vmem:[#allocation5 + $0x78] sm:$0xff]  }
 0x188   :  { %1827 = vmatmul.mubr.bf16.gmra.mrb[124].mxu0 %v850_v61  ;;  %2213 = vmatmul.mubr.bf16.gmra.mrb[124].mxu1 %v850_v61  ;;  %v4679_v63 = vpack.c.bf16 %v789_v57, %v785_v35  ;;  %v4186_v61 = vld [vmem:[#allocation5 + $0x88] sm:$0xff]   ;;  %v4205_v25 = vld [vmem:[#allocation5 + $0x30] sm:$0xff]   ;;  %v4210_v32 = vld [vmem:[#allocation5 + $0xb8] sm:$0xff]  }
 0x189   :  { %1869 = vmatprep.mubr.bf16.mxu0 %v4501_v51  ;;  %2255 = vmatprep.mubr.bf16.mxu1 %v4501_v51  ;;  %v4182_v51 = vld [vmem:[#allocation5 + $0x80] sm:$0xff]   ;;  %v4206_v28 = vld [vmem:[#allocation5 + $0xb0] sm:$0xff]  }
 0x190   :  { %1870 = vmatmul.mubr.bf16.vlgmr.msra.gmra.mrb[64].mxu0 %v4499_v46  ;;  %2256 = vmatmul.mubr.bf16.vlgmr.msra.gmra.mrb[64].mxu1 %v4499_v46  ;;  %v4189_v46 = vld [vmem:[#allocation5 + $0x10] sm:$0xff]  }
 0x191   :  { %1879 = vmatprep.mubr.bf16.mxu0 %v4513_v27  ;;  %2265 = vmatprep.mubr.bf16.mxu1 %v4513_v27  ;;  %v4192_v27 = vld [vmem:[#allocation5 + $0xd8] sm:$0xff]  }
 0x192   :  { %3478 = vmatpush3.bf16.msra.mxu0 %v4181_v41  ;;  %3590 = vmatpush3.bf16.msra.mxu1 %v4182_v51 }
 0x193   :  { %3479 = vmatprep.subr.bf16.mxu0 %v4183_v48  ;;  %3591 = vmatprep.subr.bf16.mxu1 %v4184_v55 }
 0x196   :  { %3480 = vmatpush3.bf16.msra.mxu0 %v4185_v3  ;;  %3592 = vmatpush3.bf16.msra.mxu1 %v4186_v61 }
 0x197   :  { %3481 = vmatprep.subr.bf16.mxu0 %v4187_v37  ;;  %3593 = vmatprep.subr.bf16.mxu1 %v4188_v0 }
 0x198   :  { %1880 = vmatmul.mubr.bf16.gmra.mrb[68].mxu0 %v4511_v23  ;;  %2266 = vmatmul.mubr.bf16.gmra.mrb[68].mxu1 %v4511_v23  ;;  %v4200_v23 = vld [vmem:[#allocation5 + $0xe8] sm:$0xff]  }
 0x199   :  { %1889 = vmatprep.mubr.bf16.mxu0 %v4525_v10  ;;  %2275 = vmatprep.mubr.bf16.mxu1 %v4525_v10  ;;  %v4201_v10 = vld [vmem:[#allocation5 + $0x28] sm:$0xff]  }
 0x19a   :  { %3482 = vmatpush3.bf16.msra.mxu0 %v4189_v46  ;;  %3594 = vmatpush3.bf16.msra.mxu1 %v4190_v62 }
 0x19b   :  { %3483 = vmatprep.subr.bf16.mxu0 %v4191_v2  ;;  %3595 = vmatprep.subr.bf16.mxu1 %v4192_v27 }
 0x19e   :  { %3484 = vmatpush3.bf16.msra.mxu0 %v4193_v1  ;;  %3596 = vmatpush3.bf16.msra.mxu1 %v4194_v5 }
 0x19f   :  { %3485 = vmatprep.subr.bf16.mxu0 %v4195_v8  ;;  %3597 = vmatprep.subr.bf16.mxu1 %v4196_v9 }
 0x1a0   :  { %1890 = vmatmul.mubr.bf16.gmra.mrb[72].mxu0 %v4523_v6  ;;  %2276 = vmatmul.mubr.bf16.gmra.mrb[72].mxu1 %v4523_v6  ;;  %v4208_v6 = vld [vmem:[#allocation5 + $0xf8] sm:$0xff]  }
 0x1a1   :  { %1899 = vmatprep.mubr.bf16.mxu0 %v4537_v56  ;;  %2285 = vmatprep.mubr.bf16.mxu1 %v4537_v56  ;;  %v4209_v56 = vld [vmem:[#allocation5 + $0x38] sm:$0xff]  }
 0x1a2   :  { %3486 = vmatpush3.bf16.msra.mxu0 %v4197_v13  ;;  %3598 = vmatpush3.bf16.msra.mxu1 %v4198_v14 }
 0x1a3   :  { %3487 = vmatprep.subr.bf16.mxu0 %v4199_v19  ;;  %3599 = vmatprep.subr.bf16.mxu1 %v4200_v23 }
 0x1a6   :  { %3488 = vmatpush3.bf16.msra.mxu0 %v4201_v10  ;;  %3600 = vmatpush3.bf16.msra.mxu1 %v4202_v20 }
 0x1a7   :  { %3489 = vmatprep.subr.bf16.mxu0 %v4203_v21  ;;  %3601 = vmatprep.subr.bf16.mxu1 %v4204_v24 }
 0x1a8   :  { %1900 = vmatmul.mubr.bf16.gmra.mrb[76].mxu0 %v4535_v49  ;;  %2286 = vmatmul.mubr.bf16.gmra.mrb[76].mxu1 %v4535_v49  ;;  %v982_v49 = vld [vmem:[%s5052_s4] sm:$0xf] }
 0x1a9   :  { %1909 = vmatprep.mubr.bf16.mxu0 %v4549_v39  ;;  %2295 = vmatprep.mubr.bf16.mxu1 %v4549_v39  ;;  %v4748_v39 = vrot.slane %v982_v49, %v105_v50 }
 0x1aa   :  { %3490 = vmatpush3.bf16.msra.mxu0 %v4205_v25  ;;  %3602 = vmatpush3.bf16.msra.mxu1 %v4206_v28 }
 0x1ab   :  { %3491 = vmatprep.subr.bf16.mxu0 %v4207_v29  ;;  %3603 = vmatprep.subr.bf16.mxu1 %v4208_v6 }
 0x1ae   :  { %3492 = vmatpush3.bf16.msra.mxu0 %v4209_v56  ;;  %3604 = vmatpush3.bf16.msra.mxu1 %v4210_v32 }
 0x1b0   :  { %1910 = vmatmul.mubr.bf16.gmra.mrb[80].mxu0 %v4547_v31  ;;  %2296 = vmatmul.mubr.bf16.gmra.mrb[80].mxu1 %v4547_v31  ;;  %v4744_v31 = vrot.slane %v982_v49, %v97_v34 }
 0x1b1   :  { %1919 = vmatprep.mubr.bf16.mxu0 %v4561_v22  ;;  %2305 = vmatprep.mubr.bf16.mxu1 %v4561_v22  ;;  %v4756_v22 = vrot.slane %v982_v49, %v109_v52 }
 0x1b8   :  { %1920 = vmatmul.mubr.bf16.gmra.mrb[84].mxu0 %v4559_v18  ;;  %2306 = vmatmul.mubr.bf16.gmra.mrb[84].mxu1 %v4559_v18  ;;  %v4752_v18 = vrot.slane %v982_v49, %v101_v36 }
 0x1b9   :  { %1929 = vmatprep.mubr.bf16.mxu0 %v4573_v11  ;;  %2315 = vmatprep.mubr.bf16.mxu1 %v4573_v11 }
 0x1c0   :  { %1930 = vmatmul.mubr.bf16.gmra.mrb[88].mxu0 %v4571_v7  ;;  %2316 = vmatmul.mubr.bf16.gmra.mrb[88].mxu1 %v4571_v7 }
 0x1c1   :  { %1939 = vmatprep.mubr.bf16.mxu0 %v4585_v54  ;;  %2325 = vmatprep.mubr.bf16.mxu1 %v4585_v54 }
 0x1c8   :  { %1940 = vmatmul.mubr.bf16.gmra.mrb[92].mxu0 %v4583_v47  ;;  %2326 = vmatmul.mubr.bf16.gmra.mrb[92].mxu1 %v4583_v47 }
 0x1c9   :  { %1949 = vmatprep.mubr.bf16.mxu0 %v4597_v30  ;;  %2335 = vmatprep.mubr.bf16.mxu1 %v4597_v30 }
 0x1d0   :  { %1950 = vmatmul.mubr.bf16.gmra.mrb[96].mxu0 %v4595_v26  ;;  %2336 = vmatmul.mubr.bf16.gmra.mrb[96].mxu1 %v4595_v26 }
 0x1d1   :  { %1959 = vmatprep.mubr.bf16.mxu0 %v4609_v15  ;;  %2345 = vmatprep.mubr.bf16.mxu1 %v4609_v15 }
 0x1d8   :  { %1960 = vmatmul.mubr.bf16.gmra.mrb[100].mxu0 %v4607_v12  ;;  %2346 = vmatmul.mubr.bf16.gmra.mrb[100].mxu1 %v4607_v12 }
 0x1d9   :  { %1969 = vmatprep.mubr.bf16.mxu0 %v4621_v4  ;;  %2355 = vmatprep.mubr.bf16.mxu1 %v4621_v4 }
 0x1e0   :  { %1970 = vmatmul.mubr.bf16.gmra.mrb[104].mxu0 %v4619_v60  ;;  %2356 = vmatmul.mubr.bf16.gmra.mrb[104].mxu1 %v4619_v60 }
 0x1e1   :  { %1979 = vmatprep.mubr.bf16.mxu0 %v4633_v58  ;;  %2365 = vmatprep.mubr.bf16.mxu1 %v4633_v58 }
 0x1e8   :  { %1980 = vmatmul.mubr.bf16.gmra.mrb[108].mxu0 %v4631_v53  ;;  %2366 = vmatmul.mubr.bf16.gmra.mrb[108].mxu1 %v4631_v53 }
 0x1e9   :  { %1989 = vmatprep.mubr.bf16.mxu0 %v4645_v45  ;;  %2375 = vmatprep.mubr.bf16.mxu1 %v4645_v45 }
 0x1f0   :  { %1990 = vmatmul.mubr.bf16.gmra.mrb[112].mxu0 %v4643_v42  ;;  %2376 = vmatmul.mubr.bf16.gmra.mrb[112].mxu1 %v4643_v42 }
 0x1f1   :  { %1999 = vmatprep.mubr.bf16.mxu0 %v4657_v43  ;;  %2385 = vmatprep.mubr.bf16.mxu1 %v4657_v43 }
 0x1f8   :  { %2000 = vmatmul.mubr.bf16.gmra.mrb[116].mxu0 %v4655_v38  ;;  %2386 = vmatmul.mubr.bf16.gmra.mrb[116].mxu1 %v4655_v38 }
 0x1f9   :  { %2009 = vmatprep.mubr.bf16.mxu0 %v4667_v17  ;;  %2395 = vmatprep.mubr.bf16.mxu1 %v4667_v17 }
 0x200   :  { %2010 = vmatmul.mubr.bf16.gmra.mrb[120].mxu0 %v4665_v16  ;;  %2396 = vmatmul.mubr.bf16.gmra.mrb[120].mxu1 %v4665_v16 }
 0x201   :  { %2019 = vmatprep.mubr.bf16.mxu0 %v4679_v63  ;;  %2405 = vmatprep.mubr.bf16.mxu1 %v4679_v63 }
 0x208   :  { %2020 = vmatmul.mubr.bf16.gmra.mrb[124].mxu0 %v4677_v59  ;;  %2406 = vmatmul.mubr.bf16.gmra.mrb[124].mxu1 %v4677_v59 }
 0x263   :  { %v1871_v7 = vpop.f32.mrb[64].mxu0  ;;  %v2257_v11 = vpop.f32.mrb[64].mxu1 }
 0x264   :  { %v3701_v47 = vadd.f32 %v1871_v7, %v4744_v31  ;;  %v3765_v54 = vadd.f32 %v2257_v11, %v4748_v39  ;;  %v1873_v34 = vpop.f32.mrb[65].mxu0  ;;  %v2259_v26 = vpop.f32.mrb[65].mxu1 }
 0x265   :  { %v3702_v30 = vadd.f32 %v1873_v34, %v4752_v18  ;;  %v3766_v50 = vadd.f32 %v2259_v26, %v4756_v22  ;;  %v1875_v12 = vpop.f32.mrb[66].mxu0  ;;  %v2261_v15 = vpop.f32.mrb[66].mxu1 }
 0x266   :  { %v3703_v36 = vadd.f32 %v1875_v12, %v4744_v31  ;;  %v3767_v33 = vadd.f32 %v2261_v15, %v4748_v39  ;;  %v1877_v52 = vpop.f32.mrb[67].mxu0  ;;  %v2263_v60 = vpop.f32.mrb[67].mxu1  ;;  %v2416_v58 = vmax.f32 %v3701_v47, 0.0  ;;  %v2418_v42 = vmax.f32 %v3765_v54, 0.0 }
 0x267   :  { %v3704_v4 = vadd.f32 %v1877_v52, %v4752_v18  ;;  %v3768_v53 = vadd.f32 %v2263_v60, %v4756_v22  ;;  %v2417_v43 = vmax.f32 %v3702_v30, 0.0  ;;  %v2419_v16 = vmax.f32 %v3766_v50, 0.0 }
 0x268   :  { %v2420_v45 = vmax.f32 %v3703_v36, 0.0  ;;  %v2422_v38 = vmax.f32 %v3767_v33, 0.0 }
 0x269   :  { %v2421_v17 = vmax.f32 %v3704_v4, 0.0  ;;  %v2423_v35 = vmax.f32 %v3768_v53, 0.0 }
 0x26a   :  { %v2544_v40 = vpack.c.bf16 %v2420_v45, %v2416_v58  ;;  %v2546_v41 = vpack.c.bf16 %v2422_v38, %v2418_v42 }
 0x26b   :  { %v2545_v51 = vpack.c.bf16 %v2421_v17, %v2417_v43  ;;  %v2547_v44 = vpack.c.bf16 %v2423_v35, %v2419_v16  ;;  %v1881_v48 = vpop.f32.mrb[68].mxu0  ;;  %v2267_v55 = vpop.f32.mrb[68].mxu1 }
 0x26c   :  { %v3705_v57 = vadd.f32 %v1881_v48, %v4744_v31  ;;  %v3769_v59 = vadd.f32 %v2267_v55, %v4748_v39  ;;  %v1883_v63 = vpop.f32.mrb[69].mxu0  ;;  %v2269_v3 = vpop.f32.mrb[69].mxu1 }
 0x26d   :  { %v3706_v61 = vadd.f32 %v1883_v63, %v4752_v18  ;;  %v3770_v37 = vadd.f32 %v2269_v3, %v4756_v22  ;;  %v1885_v0 = vpop.f32.mrb[70].mxu0  ;;  %v2271_v46 = vpop.f32.mrb[70].mxu1  ;;  %2896 = vmatprep.mubr.bf16.mxu0 %v2545_v51  ;;  %3057 = vmatprep.mubr.bf16.mxu1 %v2547_v44 }
 0x26e   :  { %v3707_v62 = vadd.f32 %v1885_v0, %v4744_v31  ;;  %v3771_v2 = vadd.f32 %v2271_v46, %v4748_v39  ;;  %v1887_v27 = vpop.f32.mrb[71].mxu0  ;;  %v2273_v1 = vpop.f32.mrb[71].mxu1  ;;  %2897 = vmatmul.mubr.bf16.vlgmr.msra.gmra.mrb[128].mxu0 %v2544_v40  ;;  %3058 = vmatmul.mubr.bf16.vlgmr.msra.gmra.mrb[128].mxu1 %v2546_v41  ;;  %v2424_v9 = vmax.f32 %v3705_v57, 0.0  ;;  %v2426_v13 = vmax.f32 %v3769_v59, 0.0 }
 0x26f   :  { %v3708_v5 = vadd.f32 %v1887_v27, %v4752_v18  ;;  %v3772_v8 = vadd.f32 %v2273_v1, %v4756_v22  ;;  %v2425_v23 = vmax.f32 %v3706_v61, 0.0  ;;  %v2427_v10 = vmax.f32 %v3770_v37, 0.0 }
 0x270   :  { %v2428_v14 = vmax.f32 %v3707_v62, 0.0  ;;  %v2430_v19 = vmax.f32 %v3771_v2, 0.0 }
 0x271   :  { %v2429_v20 = vmax.f32 %v3708_v5, 0.0  ;;  %v2431_v21 = vmax.f32 %v3772_v8, 0.0 }
 0x272   :  { %v2548_v24 = vpack.c.bf16 %v2428_v14, %v2424_v9  ;;  %v2550_v25 = vpack.c.bf16 %v2430_v19, %v2426_v13 }
 0x273   :  { %v2549_v28 = vpack.c.bf16 %v2429_v20, %v2425_v23  ;;  %v2551_v29 = vpack.c.bf16 %v2431_v21, %v2427_v10  ;;  %v1891_v6 = vpop.f32.mrb[72].mxu0  ;;  %v2277_v56 = vpop.f32.mrb[72].mxu1 }
 0x274   :  { %v3709_v32 = vadd.f32 %v1891_v6, %v4744_v31  ;;  %v3773_v49 = vadd.f32 %v2277_v56, %v4748_v39  ;;  %v1893_v7 = vpop.f32.mrb[73].mxu0  ;;  %v2279_v11 = vpop.f32.mrb[73].mxu1 }
 0x275   :  { %v3710_v47 = vadd.f32 %v1893_v7, %v4752_v18  ;;  %v3774_v54 = vadd.f32 %v2279_v11, %v4756_v22  ;;  %v1895_v34 = vpop.f32.mrb[74].mxu0  ;;  %v2281_v26 = vpop.f32.mrb[74].mxu1  ;;  %2904 = vmatprep.mubr.bf16.mxu0 %v2549_v28  ;;  %3065 = vmatprep.mubr.bf16.mxu1 %v2551_v29 }
 0x276   :  { %v3711_v30 = vadd.f32 %v1895_v34, %v4744_v31  ;;  %v3775_v50 = vadd.f32 %v2281_v26, %v4748_v39  ;;  %v1897_v12 = vpop.f32.mrb[75].mxu0  ;;  %v2283_v15 = vpop.f32.mrb[75].mxu1  ;;  %2905 = vmatmul.mubr.bf16.gmra.mrb[132].mxu0 %v2548_v24  ;;  %3066 = vmatmul.mubr.bf16.gmra.mrb[132].mxu1 %v2550_v25  ;;  %v2432_v52 = vmax.f32 %v3709_v32, 0.0  ;;  %v2434_v60 = vmax.f32 %v3773_v49, 0.0 }
 0x277   :  { %v3712_v36 = vadd.f32 %v1897_v12, %v4752_v18  ;;  %v3776_v33 = vadd.f32 %v2283_v15, %v4756_v22  ;;  %v2433_v58 = vmax.f32 %v3710_v47, 0.0  ;;  %v2435_v42 = vmax.f32 %v3774_v54, 0.0 }
 0x278   :  { %v2436_v4 = vmax.f32 %v3711_v30, 0.0  ;;  %v2438_v53 = vmax.f32 %v3775_v50, 0.0 }
 0x279   :  { %v2437_v45 = vmax.f32 %v3712_v36, 0.0  ;;  %v2439_v38 = vmax.f32 %v3776_v33, 0.0 }
 0x27a   :  { %v2552_v43 = vpack.c.bf16 %v2436_v4, %v2432_v52  ;;  %v2554_v16 = vpack.c.bf16 %v2438_v53, %v2434_v60 }
 0x27b   :  { %v2553_v17 = vpack.c.bf16 %v2437_v45, %v2433_v58  ;;  %v2555_v35 = vpack.c.bf16 %v2439_v38, %v2435_v42  ;;  %v1901_v40 = vpop.f32.mrb[76].mxu0  ;;  %v2287_v41 = vpop.f32.mrb[76].mxu1 }
 0x27c   :  { %v3713_v51 = vadd.f32 %v1901_v40, %v4744_v31  ;;  %v3777_v44 = vadd.f32 %v2287_v41, %v4748_v39  ;;  %v1903_v48 = vpop.f32.mrb[77].mxu0  ;;  %v2289_v55 = vpop.f32.mrb[77].mxu1 }
 0x27d   :  { %v3714_v57 = vadd.f32 %v1903_v48, %v4752_v18  ;;  %v3778_v59 = vadd.f32 %v2289_v55, %v4756_v22  ;;  %v1905_v63 = vpop.f32.mrb[78].mxu0  ;;  %v2291_v3 = vpop.f32.mrb[78].mxu1  ;;  %2912 = vmatprep.mubr.bf16.mxu0 %v2553_v17  ;;  %3073 = vmatprep.mubr.bf16.mxu1 %v2555_v35 }
 0x27e   :  { %v3715_v61 = vadd.f32 %v1905_v63, %v4744_v31  ;;  %v3779_v37 = vadd.f32 %v2291_v3, %v4748_v39  ;;  %v1907_v0 = vpop.f32.mrb[79].mxu0  ;;  %v2293_v46 = vpop.f32.mrb[79].mxu1  ;;  %2913 = vmatmul.mubr.bf16.gmra.mrb[136].mxu0 %v2552_v43  ;;  %3074 = vmatmul.mubr.bf16.gmra.mrb[136].mxu1 %v2554_v16  ;;  %v2440_v27 = vmax.f32 %v3713_v51, 0.0  ;;  %v2442_v1 = vmax.f32 %v3777_v44, 0.0 }
 0x27f   :  { %v3716_v62 = vadd.f32 %v1907_v0, %v4752_v18  ;;  %v3780_v2 = vadd.f32 %v2293_v46, %v4756_v22  ;;  %v2441_v9 = vmax.f32 %v3714_v57, 0.0  ;;  %v2443_v13 = vmax.f32 %v3778_v59, 0.0 }
 0x280   :  { %v2444_v5 = vmax.f32 %v3715_v61, 0.0  ;;  %v2446_v8 = vmax.f32 %v3779_v37, 0.0 }
 0x281   :  { %v2445_v14 = vmax.f32 %v3716_v62, 0.0  ;;  %v2447_v19 = vmax.f32 %v3780_v2, 0.0 }
 0x282   :  { %v2556_v23 = vpack.c.bf16 %v2444_v5, %v2440_v27  ;;  %v2558_v10 = vpack.c.bf16 %v2446_v8, %v2442_v1 }
 0x283   :  { %v2557_v20 = vpack.c.bf16 %v2445_v14, %v2441_v9  ;;  %v2559_v21 = vpack.c.bf16 %v2447_v19, %v2443_v13  ;;  %v1911_v24 = vpop.f32.mrb[80].mxu0  ;;  %v2297_v25 = vpop.f32.mrb[80].mxu1 }
 0x284   :  { %v3717_v28 = vadd.f32 %v1911_v24, %v4744_v31  ;;  %v3781_v29 = vadd.f32 %v2297_v25, %v4748_v39  ;;  %v1913_v6 = vpop.f32.mrb[81].mxu0  ;;  %v2299_v56 = vpop.f32.mrb[81].mxu1 }
 0x285   :  { %v3718_v32 = vadd.f32 %v1913_v6, %v4752_v18  ;;  %v3782_v49 = vadd.f32 %v2299_v56, %v4756_v22  ;;  %v1915_v7 = vpop.f32.mrb[82].mxu0  ;;  %v2301_v11 = vpop.f32.mrb[82].mxu1  ;;  %2920 = vmatprep.mubr.bf16.mxu0 %v2557_v20  ;;  %3081 = vmatprep.mubr.bf16.mxu1 %v2559_v21 }
 0x286   :  { %v3719_v47 = vadd.f32 %v1915_v7, %v4744_v31  ;;  %v3783_v54 = vadd.f32 %v2301_v11, %v4748_v39  ;;  %v1917_v34 = vpop.f32.mrb[83].mxu0  ;;  %v2303_v26 = vpop.f32.mrb[83].mxu1  ;;  %2921 = vmatmul.mubr.bf16.gmra.mrb[140].mxu0 %v2556_v23  ;;  %3082 = vmatmul.mubr.bf16.gmra.mrb[140].mxu1 %v2558_v10  ;;  %v2448_v12 = vmax.f32 %v3717_v28, 0.0  ;;  %v2450_v15 = vmax.f32 %v3781_v29, 0.0 }
 0x287   :  { %v3720_v30 = vadd.f32 %v1917_v34, %v4752_v18  ;;  %v3784_v50 = vadd.f32 %v2303_v26, %v4756_v22  ;;  %v2449_v52 = vmax.f32 %v3718_v32, 0.0  ;;  %v2451_v60 = vmax.f32 %v3782_v49, 0.0 }
 0x288   :  { %v2452_v36 = vmax.f32 %v3719_v47, 0.0  ;;  %v2454_v33 = vmax.f32 %v3783_v54, 0.0 }
 0x289   :  { %v2453_v4 = vmax.f32 %v3720_v30, 0.0  ;;  %v2455_v53 = vmax.f32 %v3784_v50, 0.0 }
 0x28a   :  { %v2560_v58 = vpack.c.bf16 %v2452_v36, %v2448_v12  ;;  %v2562_v42 = vpack.c.bf16 %v2454_v33, %v2450_v15 }
 0x28b   :  { %v2561_v45 = vpack.c.bf16 %v2453_v4, %v2449_v52  ;;  %v2563_v38 = vpack.c.bf16 %v2455_v53, %v2451_v60  ;;  %v1921_v43 = vpop.f32.mrb[84].mxu0  ;;  %v2307_v16 = vpop.f32.mrb[84].mxu1 }
 0x28c   :  { %v3721_v17 = vadd.f32 %v1921_v43, %v4744_v31  ;;  %v3785_v35 = vadd.f32 %v2307_v16, %v4748_v39  ;;  %v1923_v40 = vpop.f32.mrb[85].mxu0  ;;  %v2309_v41 = vpop.f32.mrb[85].mxu1 }
 0x28d   :  { %v3722_v51 = vadd.f32 %v1923_v40, %v4752_v18  ;;  %v3786_v44 = vadd.f32 %v2309_v41, %v4756_v22  ;;  %v1925_v48 = vpop.f32.mrb[86].mxu0  ;;  %v2311_v55 = vpop.f32.mrb[86].mxu1  ;;  %2928 = vmatprep.mubr.bf16.mxu0 %v2561_v45  ;;  %3089 = vmatprep.mubr.bf16.mxu1 %v2563_v38 }
 0x28e   :  { %v3723_v57 = vadd.f32 %v1925_v48, %v4744_v31  ;;  %v3787_v59 = vadd.f32 %v2311_v55, %v4748_v39  ;;  %v1927_v63 = vpop.f32.mrb[87].mxu0  ;;  %v2313_v3 = vpop.f32.mrb[87].mxu1  ;;  %2929 = vmatmul.mubr.bf16.gmra.mrb[144].mxu0 %v2560_v58  ;;  %3090 = vmatmul.mubr.bf16.gmra.mrb[144].mxu1 %v2562_v42  ;;  %v2456_v0 = vmax.f32 %v3721_v17, 0.0  ;;  %v2458_v46 = vmax.f32 %v3785_v35, 0.0 }
 0x28f   :  { %v3724_v61 = vadd.f32 %v1927_v63, %v4752_v18  ;;  %v3788_v37 = vadd.f32 %v2313_v3, %v4756_v22  ;;  %v2457_v27 = vmax.f32 %v3722_v51, 0.0  ;;  %v2459_v1 = vmax.f32 %v3786_v44, 0.0 }
 0x290   :  { %v2460_v62 = vmax.f32 %v3723_v57, 0.0  ;;  %v2462_v2 = vmax.f32 %v3787_v59, 0.0 }
 0x291   :  { %v2461_v5 = vmax.f32 %v3724_v61, 0.0  ;;  %v2463_v8 = vmax.f32 %v3788_v37, 0.0 }
 0x292   :  { %v2564_v9 = vpack.c.bf16 %v2460_v62, %v2456_v0  ;;  %v2566_v13 = vpack.c.bf16 %v2462_v2, %v2458_v46 }
 0x293   :  { %v2565_v14 = vpack.c.bf16 %v2461_v5, %v2457_v27  ;;  %v2567_v19 = vpack.c.bf16 %v2463_v8, %v2459_v1  ;;  %v1931_v23 = vpop.f32.mrb[88].mxu0  ;;  %v2317_v10 = vpop.f32.mrb[88].mxu1 }
 0x294   :  { %v3725_v20 = vadd.f32 %v1931_v23, %v4744_v31  ;;  %v3789_v21 = vadd.f32 %v2317_v10, %v4748_v39  ;;  %v1933_v24 = vpop.f32.mrb[89].mxu0  ;;  %v2319_v25 = vpop.f32.mrb[89].mxu1 }
 0x295   :  { %v3726_v28 = vadd.f32 %v1933_v24, %v4752_v18  ;;  %v3790_v29 = vadd.f32 %v2319_v25, %v4756_v22  ;;  %v1935_v6 = vpop.f32.mrb[90].mxu0  ;;  %v2321_v56 = vpop.f32.mrb[90].mxu1  ;;  %2936 = vmatprep.mubr.bf16.mxu0 %v2565_v14  ;;  %3097 = vmatprep.mubr.bf16.mxu1 %v2567_v19 }
 0x296   :  { %v3727_v32 = vadd.f32 %v1935_v6, %v4744_v31  ;;  %v3791_v49 = vadd.f32 %v2321_v56, %v4748_v39  ;;  %v1937_v7 = vpop.f32.mrb[91].mxu0  ;;  %v2323_v11 = vpop.f32.mrb[91].mxu1  ;;  %2937 = vmatmul.mubr.bf16.gmra.mrb[148].mxu0 %v2564_v9  ;;  %3098 = vmatmul.mubr.bf16.gmra.mrb[148].mxu1 %v2566_v13  ;;  %v2464_v34 = vmax.f32 %v3725_v20, 0.0  ;;  %v2466_v26 = vmax.f32 %v3789_v21, 0.0 }
 0x297   :  { %v3728_v47 = vadd.f32 %v1937_v7, %v4752_v18  ;;  %v3792_v54 = vadd.f32 %v2323_v11, %v4756_v22  ;;  %v2465_v12 = vmax.f32 %v3726_v28, 0.0  ;;  %v2467_v15 = vmax.f32 %v3790_v29, 0.0 }
 0x298   :  { %v2468_v30 = vmax.f32 %v3727_v32, 0.0  ;;  %v2470_v50 = vmax.f32 %v3791_v49, 0.0 }
 0x299   :  { %v2469_v36 = vmax.f32 %v3728_v47, 0.0  ;;  %v2471_v33 = vmax.f32 %v3792_v54, 0.0 }
 0x29a   :  { %v2568_v52 = vpack.c.bf16 %v2468_v30, %v2464_v34  ;;  %v2570_v60 = vpack.c.bf16 %v2470_v50, %v2466_v26 }
 0x29b   :  { %v2569_v4 = vpack.c.bf16 %v2469_v36, %v2465_v12  ;;  %v2571_v53 = vpack.c.bf16 %v2471_v33, %v2467_v15  ;;  %v1941_v58 = vpop.f32.mrb[92].mxu0  ;;  %v2327_v42 = vpop.f32.mrb[92].mxu1 }
 0x29c   :  { %v3729_v45 = vadd.f32 %v1941_v58, %v4744_v31  ;;  %v3793_v38 = vadd.f32 %v2327_v42, %v4748_v39  ;;  %v1943_v43 = vpop.f32.mrb[93].mxu0  ;;  %v2329_v16 = vpop.f32.mrb[93].mxu1 }
 0x29d   :  { %v3730_v17 = vadd.f32 %v1943_v43, %v4752_v18  ;;  %v3794_v35 = vadd.f32 %v2329_v16, %v4756_v22  ;;  %v1945_v40 = vpop.f32.mrb[94].mxu0  ;;  %v2331_v41 = vpop.f32.mrb[94].mxu1  ;;  %2944 = vmatprep.mubr.bf16.mxu0 %v2569_v4  ;;  %3105 = vmatprep.mubr.bf16.mxu1 %v2571_v53 }
 0x29e   :  { %v3731_v51 = vadd.f32 %v1945_v40, %v4744_v31  ;;  %v3795_v44 = vadd.f32 %v2331_v41, %v4748_v39  ;;  %v1947_v48 = vpop.f32.mrb[95].mxu0  ;;  %v2333_v55 = vpop.f32.mrb[95].mxu1  ;;  %2945 = vmatmul.mubr.bf16.gmra.mrb[152].mxu0 %v2568_v52  ;;  %3106 = vmatmul.mubr.bf16.gmra.mrb[152].mxu1 %v2570_v60  ;;  %v2472_v63 = vmax.f32 %v3729_v45, 0.0  ;;  %v2474_v3 = vmax.f32 %v3793_v38, 0.0 }
 0x29f   :  { %v3732_v57 = vadd.f32 %v1947_v48, %v4752_v18  ;;  %v3796_v59 = vadd.f32 %v2333_v55, %v4756_v22  ;;  %v2473_v0 = vmax.f32 %v3730_v17, 0.0  ;;  %v2475_v46 = vmax.f32 %v3794_v35, 0.0 }
 0x2a0   :  { %v2476_v61 = vmax.f32 %v3731_v51, 0.0  ;;  %v2478_v37 = vmax.f32 %v3795_v44, 0.0 }
 0x2a1   :  { %v2477_v62 = vmax.f32 %v3732_v57, 0.0  ;;  %v2479_v2 = vmax.f32 %v3796_v59, 0.0 }
 0x2a2   :  { %v2572_v27 = vpack.c.bf16 %v2476_v61, %v2472_v63  ;;  %v2574_v1 = vpack.c.bf16 %v2478_v37, %v2474_v3 }
 0x2a3   :  { %v2573_v5 = vpack.c.bf16 %v2477_v62, %v2473_v0  ;;  %v2575_v8 = vpack.c.bf16 %v2479_v2, %v2475_v46  ;;  %v1951_v9 = vpop.f32.mrb[96].mxu0  ;;  %v2337_v13 = vpop.f32.mrb[96].mxu1 }
 0x2a4   :  { %v3733_v14 = vadd.f32 %v1951_v9, %v4744_v31  ;;  %v3797_v19 = vadd.f32 %v2337_v13, %v4748_v39  ;;  %v1953_v23 = vpop.f32.mrb[97].mxu0  ;;  %v2339_v10 = vpop.f32.mrb[97].mxu1 }
 0x2a5   :  { %v3734_v20 = vadd.f32 %v1953_v23, %v4752_v18  ;;  %v3798_v21 = vadd.f32 %v2339_v10, %v4756_v22  ;;  %v1955_v24 = vpop.f32.mrb[98].mxu0  ;;  %v2341_v25 = vpop.f32.mrb[98].mxu1  ;;  %2952 = vmatprep.mubr.bf16.mxu0 %v2573_v5  ;;  %3113 = vmatprep.mubr.bf16.mxu1 %v2575_v8 }
 0x2a6   :  { %v3735_v28 = vadd.f32 %v1955_v24, %v4744_v31  ;;  %v3799_v29 = vadd.f32 %v2341_v25, %v4748_v39  ;;  %v1957_v6 = vpop.f32.mrb[99].mxu0  ;;  %v2343_v56 = vpop.f32.mrb[99].mxu1  ;;  %2953 = vmatmul.mubr.bf16.gmra.mrb[156].mxu0 %v2572_v27  ;;  %3114 = vmatmul.mubr.bf16.gmra.mrb[156].mxu1 %v2574_v1  ;;  %v2480_v7 = vmax.f32 %v3733_v14, 0.0  ;;  %v2482_v11 = vmax.f32 %v3797_v19, 0.0 }
 0x2a7   :  { %v3736_v32 = vadd.f32 %v1957_v6, %v4752_v18  ;;  %v3800_v49 = vadd.f32 %v2343_v56, %v4756_v22  ;;  %v2481_v34 = vmax.f32 %v3734_v20, 0.0  ;;  %v2483_v26 = vmax.f32 %v3798_v21, 0.0 }
 0x2a8   :  { %v2484_v47 = vmax.f32 %v3735_v28, 0.0  ;;  %v2486_v54 = vmax.f32 %v3799_v29, 0.0 }
 0x2a9   :  { %v2485_v30 = vmax.f32 %v3736_v32, 0.0  ;;  %v2487_v50 = vmax.f32 %v3800_v49, 0.0 }
 0x2aa   :  { %v2576_v12 = vpack.c.bf16 %v2484_v47, %v2480_v7  ;;  %v2578_v15 = vpack.c.bf16 %v2486_v54, %v2482_v11 }
 0x2ab   :  { %v2577_v36 = vpack.c.bf16 %v2485_v30, %v2481_v34  ;;  %v2579_v33 = vpack.c.bf16 %v2487_v50, %v2483_v26  ;;  %v1961_v52 = vpop.f32.mrb[100].mxu0  ;;  %v2347_v60 = vpop.f32.mrb[100].mxu1 }
 0x2ac   :  { %v3737_v4 = vadd.f32 %v1961_v52, %v4744_v31  ;;  %v3801_v53 = vadd.f32 %v2347_v60, %v4748_v39  ;;  %v1963_v58 = vpop.f32.mrb[101].mxu0  ;;  %v2349_v42 = vpop.f32.mrb[101].mxu1 }
 0x2ad   :  { %v3738_v45 = vadd.f32 %v1963_v58, %v4752_v18  ;;  %v3802_v38 = vadd.f32 %v2349_v42, %v4756_v22  ;;  %v1965_v43 = vpop.f32.mrb[102].mxu0  ;;  %v2351_v16 = vpop.f32.mrb[102].mxu1  ;;  %2960 = vmatprep.mubr.bf16.mxu0 %v2577_v36  ;;  %3121 = vmatprep.mubr.bf16.mxu1 %v2579_v33 }
 0x2ae   :  { %v3739_v17 = vadd.f32 %v1965_v43, %v4744_v31  ;;  %v3803_v35 = vadd.f32 %v2351_v16, %v4748_v39  ;;  %v1967_v40 = vpop.f32.mrb[103].mxu0  ;;  %v2353_v41 = vpop.f32.mrb[103].mxu1  ;;  %2961 = vmatmul.mubr.bf16.gmra.mrb[160].mxu0 %v2576_v12  ;;  %3122 = vmatmul.mubr.bf16.gmra.mrb[160].mxu1 %v2578_v15  ;;  %v2488_v48 = vmax.f32 %v3737_v4, 0.0  ;;  %v2490_v55 = vmax.f32 %v3801_v53, 0.0 }
 0x2af   :  { %v3740_v51 = vadd.f32 %v1967_v40, %v4752_v18  ;;  %v3804_v44 = vadd.f32 %v2353_v41, %v4756_v22  ;;  %v2489_v63 = vmax.f32 %v3738_v45, 0.0  ;;  %v2491_v3 = vmax.f32 %v3802_v38, 0.0 }
 0x2b0   :  { %v2492_v57 = vmax.f32 %v3739_v17, 0.0  ;;  %v2494_v59 = vmax.f32 %v3803_v35, 0.0 }
 0x2b1   :  { %v2493_v61 = vmax.f32 %v3740_v51, 0.0  ;;  %v2495_v37 = vmax.f32 %v3804_v44, 0.0 }
 0x2b2   :  { %v2580_v0 = vpack.c.bf16 %v2492_v57, %v2488_v48  ;;  %v2582_v46 = vpack.c.bf16 %v2494_v59, %v2490_v55 }
 0x2b3   :  { %v2581_v62 = vpack.c.bf16 %v2493_v61, %v2489_v63  ;;  %v2583_v2 = vpack.c.bf16 %v2495_v37, %v2491_v3  ;;  %v1971_v27 = vpop.f32.mrb[104].mxu0  ;;  %v2357_v1 = vpop.f32.mrb[104].mxu1 }
 0x2b4   :  { %v3741_v5 = vadd.f32 %v1971_v27, %v4744_v31  ;;  %v3805_v8 = vadd.f32 %v2357_v1, %v4748_v39  ;;  %v1973_v9 = vpop.f32.mrb[105].mxu0  ;;  %v2359_v13 = vpop.f32.mrb[105].mxu1 }
 0x2b5   :  { %v3742_v14 = vadd.f32 %v1973_v9, %v4752_v18  ;;  %v3806_v19 = vadd.f32 %v2359_v13, %v4756_v22  ;;  %v1975_v23 = vpop.f32.mrb[106].mxu0  ;;  %v2361_v10 = vpop.f32.mrb[106].mxu1  ;;  %2968 = vmatprep.mubr.bf16.mxu0 %v2581_v62  ;;  %3129 = vmatprep.mubr.bf16.mxu1 %v2583_v2 }
 0x2b6   :  { %v3743_v20 = vadd.f32 %v1975_v23, %v4744_v31  ;;  %v3807_v21 = vadd.f32 %v2361_v10, %v4748_v39  ;;  %v1977_v24 = vpop.f32.mrb[107].mxu0  ;;  %v2363_v25 = vpop.f32.mrb[107].mxu1  ;;  %2969 = vmatmul.mubr.bf16.gmra.mrb[164].mxu0 %v2580_v0  ;;  %3130 = vmatmul.mubr.bf16.gmra.mrb[164].mxu1 %v2582_v46  ;;  %v2496_v6 = vmax.f32 %v3741_v5, 0.0  ;;  %v2498_v56 = vmax.f32 %v3805_v8, 0.0 }
 0x2b7   :  { %v3744_v28 = vadd.f32 %v1977_v24, %v4752_v18  ;;  %v3808_v29 = vadd.f32 %v2363_v25, %v4756_v22  ;;  %v2497_v7 = vmax.f32 %v3742_v14, 0.0  ;;  %v2499_v11 = vmax.f32 %v3806_v19, 0.0 }
 0x2b8   :  { %v2500_v32 = vmax.f32 %v3743_v20, 0.0  ;;  %v2502_v49 = vmax.f32 %v3807_v21, 0.0 }
 0x2b9   :  { %v2501_v47 = vmax.f32 %v3744_v28, 0.0  ;;  %v2503_v54 = vmax.f32 %v3808_v29, 0.0 }
 0x2ba   :  { %v2584_v34 = vpack.c.bf16 %v2500_v32, %v2496_v6  ;;  %v2586_v26 = vpack.c.bf16 %v2502_v49, %v2498_v56 }
 0x2bb   :  { %v2585_v30 = vpack.c.bf16 %v2501_v47, %v2497_v7  ;;  %v2587_v50 = vpack.c.bf16 %v2503_v54, %v2499_v11  ;;  %v1981_v12 = vpop.f32.mrb[108].mxu0  ;;  %v2367_v15 = vpop.f32.mrb[108].mxu1 }
 0x2bc   :  { %v3745_v36 = vadd.f32 %v1981_v12, %v4744_v31  ;;  %v3809_v33 = vadd.f32 %v2367_v15, %v4748_v39  ;;  %v1983_v52 = vpop.f32.mrb[109].mxu0  ;;  %v2369_v60 = vpop.f32.mrb[109].mxu1 }
 0x2bd   :  { %v3746_v4 = vadd.f32 %v1983_v52, %v4752_v18  ;;  %v3810_v53 = vadd.f32 %v2369_v60, %v4756_v22  ;;  %v1985_v58 = vpop.f32.mrb[110].mxu0  ;;  %v2371_v42 = vpop.f32.mrb[110].mxu1  ;;  %2976 = vmatprep.mubr.bf16.mxu0 %v2585_v30  ;;  %3137 = vmatprep.mubr.bf16.mxu1 %v2587_v50 }
 0x2be   :  { %v3747_v45 = vadd.f32 %v1985_v58, %v4744_v31  ;;  %v3811_v38 = vadd.f32 %v2371_v42, %v4748_v39  ;;  %v1987_v43 = vpop.f32.mrb[111].mxu0  ;;  %v2373_v16 = vpop.f32.mrb[111].mxu1  ;;  %2977 = vmatmul.mubr.bf16.gmra.mrb[168].mxu0 %v2584_v34  ;;  %3138 = vmatmul.mubr.bf16.gmra.mrb[168].mxu1 %v2586_v26  ;;  %v2504_v40 = vmax.f32 %v3745_v36, 0.0  ;;  %v2506_v41 = vmax.f32 %v3809_v33, 0.0 }
 0x2bf   :  { %v3748_v17 = vadd.f32 %v1987_v43, %v4752_v18  ;;  %v3812_v35 = vadd.f32 %v2373_v16, %v4756_v22  ;;  %v2505_v48 = vmax.f32 %v3746_v4, 0.0  ;;  %v2507_v55 = vmax.f32 %v3810_v53, 0.0 }
 0x2c0   :  { %v2508_v51 = vmax.f32 %v3747_v45, 0.0  ;;  %v2510_v44 = vmax.f32 %v3811_v38, 0.0 }
 0x2c1   :  { %v2509_v57 = vmax.f32 %v3748_v17, 0.0  ;;  %v2511_v59 = vmax.f32 %v3812_v35, 0.0 }
 0x2c2   :  { %v2588_v63 = vpack.c.bf16 %v2508_v51, %v2504_v40  ;;  %v2590_v3 = vpack.c.bf16 %v2510_v44, %v2506_v41 }
 0x2c3   :  { %v2589_v61 = vpack.c.bf16 %v2509_v57, %v2505_v48  ;;  %v2591_v37 = vpack.c.bf16 %v2511_v59, %v2507_v55  ;;  %v1991_v0 = vpop.f32.mrb[112].mxu0  ;;  %v2377_v46 = vpop.f32.mrb[112].mxu1 }
 0x2c4   :  { %v3749_v62 = vadd.f32 %v1991_v0, %v4744_v31  ;;  %v3813_v2 = vadd.f32 %v2377_v46, %v4748_v39  ;;  %v1993_v27 = vpop.f32.mrb[113].mxu0  ;;  %v2379_v1 = vpop.f32.mrb[113].mxu1 }
 0x2c5   :  { %v3750_v5 = vadd.f32 %v1993_v27, %v4752_v18  ;;  %v3814_v8 = vadd.f32 %v2379_v1, %v4756_v22  ;;  %v1995_v9 = vpop.f32.mrb[114].mxu0  ;;  %v2381_v13 = vpop.f32.mrb[114].mxu1  ;;  %2984 = vmatprep.mubr.bf16.mxu0 %v2589_v61  ;;  %3145 = vmatprep.mubr.bf16.mxu1 %v2591_v37 }
 0x2c6   :  { %v3751_v14 = vadd.f32 %v1995_v9, %v4744_v31  ;;  %v3815_v19 = vadd.f32 %v2381_v13, %v4748_v39  ;;  %v1997_v23 = vpop.f32.mrb[115].mxu0  ;;  %v2383_v10 = vpop.f32.mrb[115].mxu1  ;;  %2985 = vmatmul.mubr.bf16.gmra.mrb[172].mxu0 %v2588_v63  ;;  %3146 = vmatmul.mubr.bf16.gmra.mrb[172].mxu1 %v2590_v3  ;;  %v2512_v24 = vmax.f32 %v3749_v62, 0.0  ;;  %v2514_v25 = vmax.f32 %v3813_v2, 0.0 }
 0x2c7   :  { %v3752_v20 = vadd.f32 %v1997_v23, %v4752_v18  ;;  %v3816_v21 = vadd.f32 %v2383_v10, %v4756_v22  ;;  %v2513_v6 = vmax.f32 %v3750_v5, 0.0  ;;  %v2515_v56 = vmax.f32 %v3814_v8, 0.0 }
 0x2c8   :  { %v2516_v28 = vmax.f32 %v3751_v14, 0.0  ;;  %v2518_v29 = vmax.f32 %v3815_v19, 0.0 }
 0x2c9   :  { %v2517_v32 = vmax.f32 %v3752_v20, 0.0  ;;  %v2519_v49 = vmax.f32 %v3816_v21, 0.0 }
 0x2ca   :  { %v2592_v7 = vpack.c.bf16 %v2516_v28, %v2512_v24  ;;  %v2594_v11 = vpack.c.bf16 %v2518_v29, %v2514_v25 }
 0x2cb   :  { %v2593_v47 = vpack.c.bf16 %v2517_v32, %v2513_v6  ;;  %v2595_v54 = vpack.c.bf16 %v2519_v49, %v2515_v56  ;;  %v2001_v34 = vpop.f32.mrb[116].mxu0  ;;  %v2387_v26 = vpop.f32.mrb[116].mxu1 }
 0x2cc   :  { %v3753_v30 = vadd.f32 %v2001_v34, %v4744_v31  ;;  %v3817_v50 = vadd.f32 %v2387_v26, %v4748_v39  ;;  %v2003_v12 = vpop.f32.mrb[117].mxu0  ;;  %v2389_v15 = vpop.f32.mrb[117].mxu1 }
 0x2cd   :  { %v3754_v36 = vadd.f32 %v2003_v12, %v4752_v18  ;;  %v3818_v33 = vadd.f32 %v2389_v15, %v4756_v22  ;;  %v2005_v52 = vpop.f32.mrb[118].mxu0  ;;  %v2391_v60 = vpop.f32.mrb[118].mxu1  ;;  %2992 = vmatprep.mubr.bf16.mxu0 %v2593_v47  ;;  %3153 = vmatprep.mubr.bf16.mxu1 %v2595_v54 }
 0x2ce   :  { %v3755_v4 = vadd.f32 %v2005_v52, %v4744_v31  ;;  %v3819_v53 = vadd.f32 %v2391_v60, %v4748_v39  ;;  %v2007_v58 = vpop.f32.mrb[119].mxu0  ;;  %v2393_v42 = vpop.f32.mrb[119].mxu1  ;;  %2993 = vmatmul.mubr.bf16.gmra.mrb[176].mxu0 %v2592_v7  ;;  %3154 = vmatmul.mubr.bf16.gmra.mrb[176].mxu1 %v2594_v11  ;;  %v2520_v43 = vmax.f32 %v3753_v30, 0.0  ;;  %v2522_v16 = vmax.f32 %v3817_v50, 0.0 }
 0x2cf   :  { %v3756_v45 = vadd.f32 %v2007_v58, %v4752_v18  ;;  %v3820_v38 = vadd.f32 %v2393_v42, %v4756_v22  ;;  %v2521_v40 = vmax.f32 %v3754_v36, 0.0  ;;  %v2523_v41 = vmax.f32 %v3818_v33, 0.0 }
 0x2d0   :  { %v2524_v17 = vmax.f32 %v3755_v4, 0.0  ;;  %v2526_v35 = vmax.f32 %v3819_v53, 0.0 }
 0x2d1   :  { %v2525_v51 = vmax.f32 %v3756_v45, 0.0  ;;  %v2527_v44 = vmax.f32 %v3820_v38, 0.0 }
 0x2d2   :  { %v2596_v48 = vpack.c.bf16 %v2524_v17, %v2520_v43  ;;  %v2598_v55 = vpack.c.bf16 %v2526_v35, %v2522_v16 }
 0x2d3   :  { %v2597_v57 = vpack.c.bf16 %v2525_v51, %v2521_v40  ;;  %v2599_v59 = vpack.c.bf16 %v2527_v44, %v2523_v41  ;;  %v2011_v63 = vpop.f32.mrb[120].mxu0  ;;  %v2397_v3 = vpop.f32.mrb[120].mxu1 }
 0x2d4   :  { %v3757_v61 = vadd.f32 %v2011_v63, %v4744_v31  ;;  %v3821_v37 = vadd.f32 %v2397_v3, %v4748_v39  ;;  %v2013_v0 = vpop.f32.mrb[121].mxu0  ;;  %v2399_v46 = vpop.f32.mrb[121].mxu1  ;;  %v4886_v63 = vld [vmem:[#allocation2] ss:$0 sm:$0xff] }
 0x2d5   :  { %v3758_v62 = vadd.f32 %v2013_v0, %v4752_v18  ;;  %v3822_v2 = vadd.f32 %v2399_v46, %v4756_v22  ;;  %v2015_v27 = vpop.f32.mrb[122].mxu0  ;;  %v2401_v1 = vpop.f32.mrb[122].mxu1  ;;  %3000 = vmatprep.mubr.bf16.mxu0 %v2597_v57  ;;  %3161 = vmatprep.mubr.bf16.mxu1 %v2599_v59 }
 0x2d6   :  { %v3759_v5 = vadd.f32 %v2015_v27, %v4744_v31  ;;  %v3823_v8 = vadd.f32 %v2401_v1, %v4748_v39  ;;  %v2017_v9 = vpop.f32.mrb[123].mxu0  ;;  %v2403_v13 = vpop.f32.mrb[123].mxu1  ;;  %3001 = vmatmul.mubr.bf16.gmra.mrb[180].mxu0 %v2596_v48  ;;  %3162 = vmatmul.mubr.bf16.gmra.mrb[180].mxu1 %v2598_v55  ;;  %v2528_v23 = vmax.f32 %v3757_v61, 0.0  ;;  %v2530_v10 = vmax.f32 %v3821_v37, 0.0 }
 0x2d7   :  { %v3760_v14 = vadd.f32 %v2017_v9, %v4752_v18  ;;  %v3824_v19 = vadd.f32 %v2403_v13, %v4756_v22  ;;  %v2529_v24 = vmax.f32 %v3758_v62, 0.0  ;;  %v2531_v25 = vmax.f32 %v3822_v2, 0.0 }
 0x2d8   :  { %v2532_v20 = vmax.f32 %v3759_v5, 0.0  ;;  %v2534_v21 = vmax.f32 %v3823_v8, 0.0 }
 0x2d9   :  { %v2533_v28 = vmax.f32 %v3760_v14, 0.0  ;;  %v2535_v29 = vmax.f32 %v3824_v19, 0.0 }
 0x2da   :  { %v2600_v6 = vpack.c.bf16 %v2532_v20, %v2528_v23  ;;  %v2602_v56 = vpack.c.bf16 %v2534_v21, %v2530_v10 }
 0x2db   :  { %v2601_v32 = vpack.c.bf16 %v2533_v28, %v2529_v24  ;;  %v2603_v49 = vpack.c.bf16 %v2535_v29, %v2531_v25  ;;  %v2021_v7 = vpop.f32.mrb[124].mxu0  ;;  %v2407_v11 = vpop.f32.mrb[124].mxu1 }
 0x2dc   :  { %v3761_v47 = vadd.f32 %v2021_v7, %v4744_v31  ;;  %v3825_v54 = vadd.f32 %v2407_v11, %v4748_v39  ;;  %v2023_v34 = vpop.f32.mrb[125].mxu0  ;;  %v2409_v26 = vpop.f32.mrb[125].mxu1 }
 0x2dd   :  { %v3762_v30 = vadd.f32 %v2023_v34, %v4752_v18  ;;  %v3826_v50 = vadd.f32 %v2409_v26, %v4756_v22  ;;  %v2025_v12 = vpop.f32.mrb[126].mxu0  ;;  %v2411_v15 = vpop.f32.mrb[126].mxu1  ;;  %3008 = vmatprep.mubr.bf16.mxu0 %v2601_v32  ;;  %3169 = vmatprep.mubr.bf16.mxu1 %v2603_v49 }
 0x2de   :  { %v3763_v36 = vadd.f32 %v2025_v12, %v4744_v31  ;;  %v3827_v33 = vadd.f32 %v2411_v15, %v4748_v39  ;;  %v2027_v52 = vpop.f32.mrb[127].mxu0  ;;  %v2413_v60 = vpop.f32.mrb[127].mxu1  ;;  %3009 = vmatmul.mubr.bf16.gmra.mrb[184].mxu0 %v2600_v6  ;;  %3170 = vmatmul.mubr.bf16.gmra.mrb[184].mxu1 %v2602_v56  ;;  %v2536_v58 = vmax.f32 %v3761_v47, 0.0  ;;  %v2538_v42 = vmax.f32 %v3825_v54, 0.0 }
 0x2df   :  { %v3764_v4 = vadd.f32 %v2027_v52, %v4752_v18  ;;  %v3828_v53 = vadd.f32 %v2413_v60, %v4756_v22  ;;  %v2537_v43 = vmax.f32 %v3762_v30, 0.0  ;;  %v2539_v16 = vmax.f32 %v3826_v50, 0.0 }
 0x2e0   :  { %v2540_v45 = vmax.f32 %v3763_v36, 0.0  ;;  %v2542_v38 = vmax.f32 %v3827_v33, 0.0 }
 0x2e1   :  { %v2541_v17 = vmax.f32 %v3764_v4, 0.0  ;;  %v2543_v35 = vmax.f32 %v3828_v53, 0.0 }
 0x2e2   :  { %v2604_v40 = vpack.c.bf16 %v2540_v45, %v2536_v58  ;;  %v2606_v31 = vpack.c.bf16 %v2542_v38, %v2538_v42 }
 0x2e3   :  { %v2605_v41 = vpack.c.bf16 %v2541_v17, %v2537_v43  ;;  %v2607_v39 = vpack.c.bf16 %v2543_v35, %v2539_v16 }
 0x2e5   :  { %3016 = vmatprep.mubr.bf16.mxu0 %v2605_v41  ;;  %3177 = vmatprep.mubr.bf16.mxu1 %v2607_v39 }
 0x2e6   :  { %3017 = vmatmul.mubr.bf16.gmra.mrb[188].mxu0 %v2604_v40  ;;  %3178 = vmatmul.mubr.bf16.gmra.mrb[188].mxu1 %v2606_v31 }
 0x341   :  { %v3493_v51 = vpop.f32.mrb[128].mxu0  ;;  %v3605_v18 = vpop.f32.mrb[128].mxu1 }
 0x342   :  { %v3494_v44 = vpop.f32.mrb[129].mxu0  ;;  %v3606_v22 = vpop.f32.mrb[129].mxu1 }
 0x343   :  { %v3495_v48 = vadd.f32 %v3494_v44, %v3493_v51  ;;  %v3607_v55 = vadd.f32 %v3606_v22, %v3605_v18  ;;  %v3496_v57 = vpop.f32.mrb[130].mxu0  ;;  %v3608_v59 = vpop.f32.mrb[130].mxu1 }
 0x344   :  { %v3497_v3 = vpop.f32.mrb[131].mxu0  ;;  %v3609_v61 = vpop.f32.mrb[131].mxu1 }
 0x345   :  { %v3060_v37 = vadd.f32 %v3607_v55, %v3495_v48  ;;  %v3498_v0 = vadd.f32 %v3497_v3, %v3496_v57  ;;  %v3610_v46 = vadd.f32 %v3609_v61, %v3608_v59 }
 0x347   :  { %v3193_v62 = vadd.f32 %v4886_v63, %v3060_v37  ;;  %v3063_v2 = vadd.f32 %v3610_v46, %v3498_v0 }
 0x349   :  { %3226 = vst.msk [vmem:[%s5055_s7] sm:$0xff] %vm3225_vm3, %v3193_v62  ;;  %v3194_v27 = vadd.f32 %v4886_v63, %v3063_v2  ;;  %v3499_v1 = vpop.f32.mrb[132].mxu0  ;;  %v3611_v5 = vpop.f32.mrb[132].mxu1 }
 0x34a   :  { %v3500_v8 = vpop.f32.mrb[133].mxu0  ;;  %v3612_v9 = vpop.f32.mrb[133].mxu1 }
 0x34b   :  { %3227 = vst.msk [vmem:[%s5055_s7 + $0x8] sm:$0xff] %vm3225_vm3, %v3194_v27  ;;  %v3501_v13 = vadd.f32 %v3500_v8, %v3499_v1  ;;  %v3613_v14 = vadd.f32 %v3612_v9, %v3611_v5  ;;  %v3502_v19 = vpop.f32.mrb[134].mxu0  ;;  %v3614_v23 = vpop.f32.mrb[134].mxu1 }
 0x34c   :  { %v3503_v10 = vpop.f32.mrb[135].mxu0  ;;  %v3615_v20 = vpop.f32.mrb[135].mxu1 }
 0x34d   :  { %v3068_v21 = vadd.f32 %v3613_v14, %v3501_v13  ;;  %v3504_v24 = vadd.f32 %v3503_v10, %v3502_v19  ;;  %v3616_v25 = vadd.f32 %v3615_v20, %v3614_v23 }
 0x34f   :  { %v3195_v28 = vadd.f32 %v4886_v63, %v3068_v21  ;;  %v3071_v29 = vadd.f32 %v3616_v25, %v3504_v24 }
 0x351   :  { %3228 = vst.msk [vmem:[%s5055_s7 + $0x10] sm:$0xff] %vm3225_vm3, %v3195_v28  ;;  %v3196_v6 = vadd.f32 %v4886_v63, %v3071_v29  ;;  %v3505_v56 = vpop.f32.mrb[136].mxu0  ;;  %v3617_v32 = vpop.f32.mrb[136].mxu1 }
 0x352   :  { %v3506_v49 = vpop.f32.mrb[137].mxu0  ;;  %v3618_v7 = vpop.f32.mrb[137].mxu1 }
 0x353   :  { %3229 = vst.msk [vmem:[%s5055_s7 + $0x18] sm:$0xff] %vm3225_vm3, %v3196_v6  ;;  %v3507_v11 = vadd.f32 %v3506_v49, %v3505_v56  ;;  %v3619_v47 = vadd.f32 %v3618_v7, %v3617_v32  ;;  %v3508_v54 = vpop.f32.mrb[138].mxu0  ;;  %v3620_v34 = vpop.f32.mrb[138].mxu1 }
 0x354   :  { %v3509_v26 = vpop.f32.mrb[139].mxu0  ;;  %v3621_v30 = vpop.f32.mrb[139].mxu1 }
 0x355   :  { %v3076_v50 = vadd.f32 %v3619_v47, %v3507_v11  ;;  %v3510_v12 = vadd.f32 %v3509_v26, %v3508_v54  ;;  %v3622_v15 = vadd.f32 %v3621_v30, %v3620_v34 }
 0x357   :  { %v3197_v36 = vadd.f32 %v4886_v63, %v3076_v50  ;;  %v3079_v33 = vadd.f32 %v3622_v15, %v3510_v12 }
 0x359   :  { %3230 = vst.msk [vmem:[%s5055_s7 + $0x20] sm:$0xff] %vm3225_vm3, %v3197_v36  ;;  %v3198_v52 = vadd.f32 %v4886_v63, %v3079_v33  ;;  %v3511_v60 = vpop.f32.mrb[140].mxu0  ;;  %v3623_v4 = vpop.f32.mrb[140].mxu1 }
 0x35a   :  { %v3512_v53 = vpop.f32.mrb[141].mxu0  ;;  %v3624_v58 = vpop.f32.mrb[141].mxu1 }
 0x35b   :  { %3231 = vst.msk [vmem:[%s5055_s7 + $0x28] sm:$0xff] %vm3225_vm3, %v3198_v52  ;;  %v3513_v42 = vadd.f32 %v3512_v53, %v3511_v60  ;;  %v3625_v45 = vadd.f32 %v3624_v58, %v3623_v4  ;;  %v3514_v38 = vpop.f32.mrb[142].mxu0  ;;  %v3626_v43 = vpop.f32.mrb[142].mxu1 }
 0x35c   :  { %v3515_v16 = vpop.f32.mrb[143].mxu0  ;;  %v3627_v17 = vpop.f32.mrb[143].mxu1 }
 0x35d   :  { %v3084_v35 = vadd.f32 %v3625_v45, %v3513_v42  ;;  %v3516_v40 = vadd.f32 %v3515_v16, %v3514_v38  ;;  %v3628_v31 = vadd.f32 %v3627_v17, %v3626_v43 }
 0x35f   :  { %v3199_v41 = vadd.f32 %v4886_v63, %v3084_v35  ;;  %v3087_v39 = vadd.f32 %v3628_v31, %v3516_v40 }
 0x361   :  { %3232 = vst.msk [vmem:[%s5055_s7 + $0x30] sm:$0xff] %vm3225_vm3, %v3199_v41  ;;  %v3200_v51 = vadd.f32 %v4886_v63, %v3087_v39  ;;  %v3517_v18 = vpop.f32.mrb[144].mxu0  ;;  %v3629_v44 = vpop.f32.mrb[144].mxu1 }
 0x362   :  { %v3518_v22 = vpop.f32.mrb[145].mxu0  ;;  %v3630_v48 = vpop.f32.mrb[145].mxu1 }
 0x363   :  { %3233 = vst.msk [vmem:[%s5055_s7 + $0x38] sm:$0xff] %vm3225_vm3, %v3200_v51  ;;  %v3519_v55 = vadd.f32 %v3518_v22, %v3517_v18  ;;  %v3631_v57 = vadd.f32 %v3630_v48, %v3629_v44  ;;  %v3520_v59 = vpop.f32.mrb[146].mxu0  ;;  %v3632_v3 = vpop.f32.mrb[146].mxu1 }
 0x364   :  { %v3521_v61 = vpop.f32.mrb[147].mxu0  ;;  %v3633_v37 = vpop.f32.mrb[147].mxu1 }
 0x365   :  { %v3092_v0 = vadd.f32 %v3631_v57, %v3519_v55  ;;  %v3522_v46 = vadd.f32 %v3521_v61, %v3520_v59  ;;  %v3634_v62 = vadd.f32 %v3633_v37, %v3632_v3 }
 0x367   :  { %v3201_v2 = vadd.f32 %v4886_v63, %v3092_v0  ;;  %v3095_v27 = vadd.f32 %v3634_v62, %v3522_v46 }
 0x369   :  { %3234 = vst.msk [vmem:[%s5055_s7 + $0x40] sm:$0xff] %vm3225_vm3, %v3201_v2  ;;  %v3202_v1 = vadd.f32 %v4886_v63, %v3095_v27  ;;  %v3523_v5 = vpop.f32.mrb[148].mxu0  ;;  %v3635_v8 = vpop.f32.mrb[148].mxu1 }
 0x36a   :  { %v3524_v9 = vpop.f32.mrb[149].mxu0  ;;  %v3636_v13 = vpop.f32.mrb[149].mxu1 }
 0x36b   :  { %3235 = vst.msk [vmem:[%s5055_s7 + $0x48] sm:$0xff] %vm3225_vm3, %v3202_v1  ;;  %v3525_v14 = vadd.f32 %v3524_v9, %v3523_v5  ;;  %v3637_v19 = vadd.f32 %v3636_v13, %v3635_v8  ;;  %v3526_v23 = vpop.f32.mrb[150].mxu0  ;;  %v3638_v10 = vpop.f32.mrb[150].mxu1 }
 0x36c   :  { %v3527_v20 = vpop.f32.mrb[151].mxu0  ;;  %v3639_v21 = vpop.f32.mrb[151].mxu1 }
 0x36d   :  { %v3100_v24 = vadd.f32 %v3637_v19, %v3525_v14  ;;  %v3528_v25 = vadd.f32 %v3527_v20, %v3526_v23  ;;  %v3640_v28 = vadd.f32 %v3639_v21, %v3638_v10 }
 0x36f   :  { %v3203_v29 = vadd.f32 %v4886_v63, %v3100_v24  ;;  %v3103_v6 = vadd.f32 %v3640_v28, %v3528_v25 }
 0x371   :  { %3236 = vst.msk [vmem:[%s5055_s7 + $0x50] sm:$0xff] %vm3225_vm3, %v3203_v29  ;;  %v3204_v56 = vadd.f32 %v4886_v63, %v3103_v6  ;;  %v3529_v32 = vpop.f32.mrb[152].mxu0  ;;  %v3641_v49 = vpop.f32.mrb[152].mxu1 }
 0x372   :  { %v3530_v7 = vpop.f32.mrb[153].mxu0  ;;  %v3642_v11 = vpop.f32.mrb[153].mxu1 }
 0x373   :  { %3237 = vst.msk [vmem:[%s5055_s7 + $0x58] sm:$0xff] %vm3225_vm3, %v3204_v56  ;;  %v3531_v47 = vadd.f32 %v3530_v7, %v3529_v32  ;;  %v3643_v54 = vadd.f32 %v3642_v11, %v3641_v49  ;;  %v3532_v34 = vpop.f32.mrb[154].mxu0  ;;  %v3644_v26 = vpop.f32.mrb[154].mxu1 }
 0x374   :  { %v3533_v30 = vpop.f32.mrb[155].mxu0  ;;  %v3645_v50 = vpop.f32.mrb[155].mxu1 }
 0x375   :  { %v3108_v12 = vadd.f32 %v3643_v54, %v3531_v47  ;;  %v3534_v15 = vadd.f32 %v3533_v30, %v3532_v34  ;;  %v3646_v36 = vadd.f32 %v3645_v50, %v3644_v26 }
 0x377   :  { %v3205_v33 = vadd.f32 %v4886_v63, %v3108_v12  ;;  %v3111_v52 = vadd.f32 %v3646_v36, %v3534_v15 }
 0x379   :  { %3238 = vst.msk [vmem:[%s5055_s7 + $0x60] sm:$0xff] %vm3225_vm3, %v3205_v33  ;;  %v3206_v60 = vadd.f32 %v4886_v63, %v3111_v52  ;;  %v3535_v4 = vpop.f32.mrb[156].mxu0  ;;  %v3647_v53 = vpop.f32.mrb[156].mxu1 }
 0x37a   :  { %v3536_v58 = vpop.f32.mrb[157].mxu0  ;;  %v3648_v42 = vpop.f32.mrb[157].mxu1 }
 0x37b   :  { %3239 = vst.msk [vmem:[%s5055_s7 + $0x68] sm:$0xff] %vm3225_vm3, %v3206_v60  ;;  %v3537_v45 = vadd.f32 %v3536_v58, %v3535_v4  ;;  %v3649_v38 = vadd.f32 %v3648_v42, %v3647_v53  ;;  %v3538_v43 = vpop.f32.mrb[158].mxu0  ;;  %v3650_v16 = vpop.f32.mrb[158].mxu1 }
 0x37c   :  { %v3539_v17 = vpop.f32.mrb[159].mxu0  ;;  %v3651_v35 = vpop.f32.mrb[159].mxu1 }
 0x37d   :  { %v3116_v40 = vadd.f32 %v3649_v38, %v3537_v45  ;;  %v3540_v31 = vadd.f32 %v3539_v17, %v3538_v43  ;;  %v3652_v41 = vadd.f32 %v3651_v35, %v3650_v16 }
 0x37f   :  { %v3207_v39 = vadd.f32 %v4886_v63, %v3116_v40  ;;  %v3119_v51 = vadd.f32 %v3652_v41, %v3540_v31 }
 0x381   :  { %3240 = vst.msk [vmem:[%s5055_s7 + $0x70] sm:$0xff] %vm3225_vm3, %v3207_v39  ;;  %v3208_v18 = vadd.f32 %v4886_v63, %v3119_v51  ;;  %v3541_v44 = vpop.f32.mrb[160].mxu0  ;;  %v3653_v22 = vpop.f32.mrb[160].mxu1 }
 0x382   :  { %v3542_v48 = vpop.f32.mrb[161].mxu0  ;;  %v3654_v55 = vpop.f32.mrb[161].mxu1 }
 0x383   :  { %3241 = vst.msk [vmem:[%s5055_s7 + $0x78] sm:$0xff] %vm3225_vm3, %v3208_v18  ;;  %v3543_v57 = vadd.f32 %v3542_v48, %v3541_v44  ;;  %v3655_v59 = vadd.f32 %v3654_v55, %v3653_v22  ;;  %v3544_v3 = vpop.f32.mrb[162].mxu0  ;;  %v3656_v61 = vpop.f32.mrb[162].mxu1 }
 0x384   :  { %v3545_v37 = vpop.f32.mrb[163].mxu0  ;;  %v3657_v0 = vpop.f32.mrb[163].mxu1 }
 0x385   :  { %v3124_v46 = vadd.f32 %v3655_v59, %v3543_v57  ;;  %v3546_v62 = vadd.f32 %v3545_v37, %v3544_v3  ;;  %v3658_v2 = vadd.f32 %v3657_v0, %v3656_v61 }
 0x387   :  { %v3209_v27 = vadd.f32 %v4886_v63, %v3124_v46  ;;  %v3127_v1 = vadd.f32 %v3658_v2, %v3546_v62 }
 0x389   :  { %3242 = vst.msk [vmem:[%s5055_s7 + $0x80] sm:$0xff] %vm3225_vm3, %v3209_v27  ;;  %v3210_v5 = vadd.f32 %v4886_v63, %v3127_v1  ;;  %v3547_v8 = vpop.f32.mrb[164].mxu0  ;;  %v3659_v9 = vpop.f32.mrb[164].mxu1 }
 0x38a   :  { %v3548_v13 = vpop.f32.mrb[165].mxu0  ;;  %v3660_v14 = vpop.f32.mrb[165].mxu1 }
 0x38b   :  { %3243 = vst.msk [vmem:[%s5055_s7 + $0x88] sm:$0xff] %vm3225_vm3, %v3210_v5  ;;  %v3549_v19 = vadd.f32 %v3548_v13, %v3547_v8  ;;  %v3661_v23 = vadd.f32 %v3660_v14, %v3659_v9  ;;  %v3550_v10 = vpop.f32.mrb[166].mxu0  ;;  %v3662_v20 = vpop.f32.mrb[166].mxu1 }
 0x38c   :  { %v3551_v21 = vpop.f32.mrb[167].mxu0  ;;  %v3663_v24 = vpop.f32.mrb[167].mxu1 }
 0x38d   :  { %v3132_v25 = vadd.f32 %v3661_v23, %v3549_v19  ;;  %v3552_v28 = vadd.f32 %v3551_v21, %v3550_v10  ;;  %v3664_v29 = vadd.f32 %v3663_v24, %v3662_v20 }
 0x38f   :  { %v3211_v6 = vadd.f32 %v4886_v63, %v3132_v25  ;;  %v3135_v56 = vadd.f32 %v3664_v29, %v3552_v28 }
 0x391   :  { %3244 = vst.msk [vmem:[%s5055_s7 + $0x90] sm:$0xff] %vm3225_vm3, %v3211_v6  ;;  %v3212_v32 = vadd.f32 %v4886_v63, %v3135_v56  ;;  %v3553_v49 = vpop.f32.mrb[168].mxu0  ;;  %v3665_v7 = vpop.f32.mrb[168].mxu1 }
 0x392   :  { %v3554_v11 = vpop.f32.mrb[169].mxu0  ;;  %v3666_v47 = vpop.f32.mrb[169].mxu1 }
 0x393   :  { %3245 = vst.msk [vmem:[%s5055_s7 + $0x98] sm:$0xff] %vm3225_vm3, %v3212_v32  ;;  %v3555_v54 = vadd.f32 %v3554_v11, %v3553_v49  ;;  %v3667_v34 = vadd.f32 %v3666_v47, %v3665_v7  ;;  %v3556_v26 = vpop.f32.mrb[170].mxu0  ;;  %v3668_v30 = vpop.f32.mrb[170].mxu1 }
 0x394   :  { %v3557_v50 = vpop.f32.mrb[171].mxu0  ;;  %v3669_v12 = vpop.f32.mrb[171].mxu1 }
 0x395   :  { %v3140_v15 = vadd.f32 %v3667_v34, %v3555_v54  ;;  %v3558_v36 = vadd.f32 %v3557_v50, %v3556_v26  ;;  %v3670_v33 = vadd.f32 %v3669_v12, %v3668_v30 }
 0x397   :  { %v3213_v52 = vadd.f32 %v4886_v63, %v3140_v15  ;;  %v3143_v60 = vadd.f32 %v3670_v33, %v3558_v36 }
 0x399   :  { %3246 = vst.msk [vmem:[%s5055_s7 + $0xa0] sm:$0xff] %vm3225_vm3, %v3213_v52  ;;  %v3214_v4 = vadd.f32 %v4886_v63, %v3143_v60  ;;  %v3559_v53 = vpop.f32.mrb[172].mxu0  ;;  %v3671_v58 = vpop.f32.mrb[172].mxu1 }
 0x39a   :  { %v3560_v42 = vpop.f32.mrb[173].mxu0  ;;  %v3672_v45 = vpop.f32.mrb[173].mxu1 }
 0x39b   :  { %3247 = vst.msk [vmem:[%s5055_s7 + $0xa8] sm:$0xff] %vm3225_vm3, %v3214_v4  ;;  %v3561_v38 = vadd.f32 %v3560_v42, %v3559_v53  ;;  %v3673_v43 = vadd.f32 %v3672_v45, %v3671_v58  ;;  %v3562_v16 = vpop.f32.mrb[174].mxu0  ;;  %v3674_v17 = vpop.f32.mrb[174].mxu1 }
 0x39c   :  { %v3563_v35 = vpop.f32.mrb[175].mxu0  ;;  %v3675_v40 = vpop.f32.mrb[175].mxu1 }
 0x39d   :  { %v3148_v31 = vadd.f32 %v3673_v43, %v3561_v38  ;;  %v3564_v41 = vadd.f32 %v3563_v35, %v3562_v16  ;;  %v3676_v39 = vadd.f32 %v3675_v40, %v3674_v17 }
 0x39f   :  { %v3215_v51 = vadd.f32 %v4886_v63, %v3148_v31  ;;  %v3151_v18 = vadd.f32 %v3676_v39, %v3564_v41 }
 0x3a1   :  { %3248 = vst.msk [vmem:[%s5055_s7 + $0xb0] sm:$0xff] %vm3225_vm3, %v3215_v51  ;;  %v3216_v44 = vadd.f32 %v4886_v63, %v3151_v18  ;;  %v3565_v22 = vpop.f32.mrb[176].mxu0  ;;  %v3677_v48 = vpop.f32.mrb[176].mxu1 }
 0x3a2   :  { %v3566_v55 = vpop.f32.mrb[177].mxu0  ;;  %v3678_v57 = vpop.f32.mrb[177].mxu1 }
 0x3a3   :  { %3249 = vst.msk [vmem:[%s5055_s7 + $0xb8] sm:$0xff] %vm3225_vm3, %v3216_v44  ;;  %v3567_v59 = vadd.f32 %v3566_v55, %v3565_v22  ;;  %v3679_v3 = vadd.f32 %v3678_v57, %v3677_v48  ;;  %v3568_v61 = vpop.f32.mrb[178].mxu0  ;;  %v3680_v37 = vpop.f32.mrb[178].mxu1 }
 0x3a4   :  { %v3569_v0 = vpop.f32.mrb[179].mxu0  ;;  %v3681_v46 = vpop.f32.mrb[179].mxu1 }
 0x3a5   :  { %v3156_v62 = vadd.f32 %v3679_v3, %v3567_v59  ;;  %v3570_v2 = vadd.f32 %v3569_v0, %v3568_v61  ;;  %v3682_v27 = vadd.f32 %v3681_v46, %v3680_v37 }
 0x3a7   :  { %v3217_v1 = vadd.f32 %v4886_v63, %v3156_v62  ;;  %v3159_v5 = vadd.f32 %v3682_v27, %v3570_v2 }
 0x3a9   :  { %3250 = vst.msk [vmem:[%s5055_s7 + $0xc0] sm:$0xff] %vm3225_vm3, %v3217_v1  ;;  %v3218_v8 = vadd.f32 %v4886_v63, %v3159_v5  ;;  %v3571_v9 = vpop.f32.mrb[180].mxu0  ;;  %v3683_v13 = vpop.f32.mrb[180].mxu1 }
 0x3aa   :  { %v3572_v14 = vpop.f32.mrb[181].mxu0  ;;  %v3684_v19 = vpop.f32.mrb[181].mxu1 }
 0x3ab   :  { %3251 = vst.msk [vmem:[%s5055_s7 + $0xc8] sm:$0xff] %vm3225_vm3, %v3218_v8  ;;  %v3573_v23 = vadd.f32 %v3572_v14, %v3571_v9  ;;  %v3685_v10 = vadd.f32 %v3684_v19, %v3683_v13  ;;  %v3574_v20 = vpop.f32.mrb[182].mxu0  ;;  %v3686_v21 = vpop.f32.mrb[182].mxu1 }
 0x3ac   :  { %v3575_v24 = vpop.f32.mrb[183].mxu0  ;;  %v3687_v25 = vpop.f32.mrb[183].mxu1 }
 0x3ad   :  { %v3164_v28 = vadd.f32 %v3685_v10, %v3573_v23  ;;  %v3576_v29 = vadd.f32 %v3575_v24, %v3574_v20  ;;  %v3688_v6 = vadd.f32 %v3687_v25, %v3686_v21 }
 0x3af   :  { %v3219_v56 = vadd.f32 %v4886_v63, %v3164_v28  ;;  %v3167_v32 = vadd.f32 %v3688_v6, %v3576_v29 }
 0x3b1   :  { %3252 = vst.msk [vmem:[%s5055_s7 + $0xd0] sm:$0xff] %vm3225_vm3, %v3219_v56  ;;  %v3220_v49 = vadd.f32 %v4886_v63, %v3167_v32  ;;  %v3577_v7 = vpop.f32.mrb[184].mxu0  ;;  %v3689_v11 = vpop.f32.mrb[184].mxu1 }
 0x3b2   :  { %v3578_v47 = vpop.f32.mrb[185].mxu0  ;;  %v3690_v54 = vpop.f32.mrb[185].mxu1 }
 0x3b3   :  { %3253 = vst.msk [vmem:[%s5055_s7 + $0xd8] sm:$0xff] %vm3225_vm3, %v3220_v49  ;;  %v3579_v34 = vadd.f32 %v3578_v47, %v3577_v7  ;;  %v3691_v26 = vadd.f32 %v3690_v54, %v3689_v11  ;;  %v3580_v30 = vpop.f32.mrb[186].mxu0  ;;  %v3692_v50 = vpop.f32.mrb[186].mxu1 }
 0x3b4   :  { %v3581_v12 = vpop.f32.mrb[187].mxu0  ;;  %v3693_v15 = vpop.f32.mrb[187].mxu1 }
 0x3b5   :  { %v3172_v36 = vadd.f32 %v3691_v26, %v3579_v34  ;;  %v3582_v33 = vadd.f32 %v3581_v12, %v3580_v30  ;;  %v3694_v52 = vadd.f32 %v3693_v15, %v3692_v50 }
 0x3b7   :  { %v3221_v60 = vadd.f32 %v4886_v63, %v3172_v36  ;;  %v3175_v4 = vadd.f32 %v3694_v52, %v3582_v33 }
 0x3b9   :  { %3254 = vst.msk [vmem:[%s5055_s7 + $0xe0] sm:$0xff] %vm3225_vm3, %v3221_v60  ;;  %v3222_v53 = vadd.f32 %v4886_v63, %v3175_v4  ;;  %v3583_v58 = vpop.f32.mrb[188].mxu0  ;;  %v3695_v42 = vpop.f32.mrb[188].mxu1 }
 0x3ba   :  { %v3584_v45 = vpop.f32.mrb[189].mxu0  ;;  %v3696_v38 = vpop.f32.mrb[189].mxu1 }
 0x3bb   :  { %3255 = vst.msk [vmem:[%s5055_s7 + $0xe8] sm:$0xff] %vm3225_vm3, %v3222_v53  ;;  %v3585_v43 = vadd.f32 %v3584_v45, %v3583_v58  ;;  %v3697_v16 = vadd.f32 %v3696_v38, %v3695_v42  ;;  %v3586_v17 = vpop.f32.mrb[190].mxu0  ;;  %v3698_v35 = vpop.f32.mrb[190].mxu1 }
 0x3bc   :  { %v3587_v40 = vpop.f32.mrb[191].mxu0  ;;  %v3699_v31 = vpop.f32.mrb[191].mxu1 }
 0x3bd   :  { %v3180_v41 = vadd.f32 %v3697_v16, %v3585_v43  ;;  %v3588_v39 = vadd.f32 %v3587_v40, %v3586_v17  ;;  %v3700_v51 = vadd.f32 %v3699_v31, %v3698_v35 }
 0x3bf   :  { %v3223_v18 = vadd.f32 %v4886_v63, %v3180_v41  ;;  %v3183_v44 = vadd.f32 %v3700_v51, %v3588_v39 }
 0x3c1   :  { %3256 = vst.msk [vmem:[%s5055_s7 + $0xf0] sm:$0xff] %vm3225_vm3, %v3223_v18  ;;  %v3224_v22 = vadd.f32 %v4886_v63, %v3183_v44 }
 0x3c3   :  { %3257 = vst.msk [vmem:[%s5055_s7 + $0xf8] sm:$0xff] %vm3225_vm3, %v3224_v22 }
 0x3c4   :  { %3262 = vsyncpa [#allocation4], 1 }
 0x3c5   :  { %3263 = vsyncpa [#allocation6], 1 }

</bundles_post_ra>
